<compile_context>
chip_gen: v7x
topology: tpu7x:2x2x1
jax: 0.10.0
libtpu: 0.0.40
codegen_flags: <defaults>
</compile_context>

<pallas_src>
import functools
import numpy as np
import jax
import jax.numpy as jnp
from jax.experimental import pallas as pl
from jax.experimental.pallas import tpu as pltpu


# ----------------------------------------------------------------------------
# Pallas kernels
# ----------------------------------------------------------------------------
def transformer_stack_kernel(x_ref, wqkv_ref, bqkv_ref, wo_ref, w1_ref,
                             b1_ref, w2_ref, vec_ref, o_ref, *, num_heads):
    """One transformer layer per grid step; o_ref is the resident activation
    carrier across the (arbitrary) layer axis."""
    l = pl.program_id(1)
    Bt, S, D = x_ref.shape
    H = num_heads
    dh = D // H
    M = Bt * S
    scale = 1.0 / float(np.sqrt(dh))

    # Layer 0: seed the resident activation with the embedded input.
    @pl.when(l == 0)
    def _():
        o_ref[...] = x_ref[...]

    x = o_ref[...].reshape(M, D)                       # (B*S, D) f32 residual
    xb = x.astype(jnp.bfloat16)                        # bf16 operands, f32 acc

    # Fused QKV projection: one (B*S, D) @ (D, 3D) MXU matmul.
    qkv = jnp.dot(xb, wqkv_ref[0], preferred_element_type=jnp.float32)
    qkv = qkv + bqkv_ref[0]
    # Fold the attention scale into q once (M*D mults instead of H*S*S).
    q = (qkv[:, :D] * scale).astype(jnp.bfloat16).reshape(Bt, S, D)
    k = qkv[:, D:2 * D].astype(jnp.bfloat16).reshape(Bt, S, D)
    v = qkv[:, 2 * D:].astype(jnp.bfloat16).reshape(Bt, S, D)

    # Multi-head attention, batched over the batch dim with 3-D einsums.
    # TODO(synk): at real BERT sizes replace the per-head lane slices with a
    # head grid axis + flash-style online-softmax S tiling.
    heads = []
    for h in range(H):
        sl = slice(h * dh, (h + 1) * dh)
        qh, kh, vh = q[:, :, sl], k[:, :, sl], v[:, :, sl]
        s = jnp.einsum('bqd,bkd->bqk', qh, kh,
                       preferred_element_type=jnp.float32)
        s = s - jnp.max(s, axis=-1, keepdims=True)
        p = jnp.exp(s)
        p = p * pl.reciprocal(jnp.sum(p, axis=-1, keepdims=True), approx=True)
        heads.append(jnp.einsum('bqk,bkd->bqd', p.astype(jnp.bfloat16), vh,
                                preferred_element_type=jnp.float32))
    attn = jnp.concatenate(heads, axis=-1).reshape(M, D)

    vec = vec_ref[0]                                   # (8, D) packed vectors
    bo, g1, be1 = vec[0:1], vec[1:2], vec[2:3]
    b2, g2, be2 = vec[3:4], vec[4:5], vec[5:6]

    # Single D-wide output projection over all heads / all rows.
    attn = jnp.dot(attn.astype(jnp.bfloat16), wo_ref[0],
                   preferred_element_type=jnp.float32) + bo

    def layernorm(y, g, b):
        mu = jnp.mean(y, axis=-1, keepdims=True)
        var = jnp.mean((y - mu) ** 2, axis=-1, keepdims=True)
        return (y - mu) * jax.lax.rsqrt(var + 1e-5) * g + b

    h1 = layernorm(attn + x, g1, be1)
    ff = jnp.dot(h1.astype(jnp.bfloat16), w1_ref[0],
                 preferred_element_type=jnp.float32) + b1_ref[0]
    ff = jnp.maximum(ff, 0.0)
    ff = jnp.dot(ff.astype(jnp.bfloat16), w2_ref[0],
                 preferred_element_type=jnp.float32) + b2
    o_ref[...] = layernorm(ff + h1, g2, be2).reshape(Bt, S, D)


def head_kernel(cls_ref, wfc_ref, bfc_ref, wout_ref, bout_ref, o_ref):
    """out = (cls @ Wfc + bfc) @ Wout + bout  (Wout pre-padded to 128 lanes)."""
    h = jnp.dot(cls_ref[...].astype(jnp.bfloat16), wfc_ref[...],
                preferred_element_type=jnp.float32) + bfc_ref[...]
    o_ref[...] = jnp.dot(h.astype(jnp.bfloat16), wout_ref[...],
                         preferred_element_type=jnp.float32) + bout_ref[...]


# ----------------------------------------------------------------------------
# Wrappers
# ----------------------------------------------------------------------------
def transformer_stack(x, params, num_heads, *, b_tile=None):
    B, S, D = x.shape
    L = params["wqkv"].shape[0]
    F = params["w1"].shape[-1]
    if b_tile is None:
        b_tile = B                       # fold the full batch into one block
    nb = B // b_tile

    in_specs = [
        pl.BlockSpec((b_tile, S, D), lambda b, l: (b, 0, 0)),   # x (layer 0)
        pl.BlockSpec((1, D, 3 * D), lambda b, l: (l, 0, 0)),    # wqkv
        pl.BlockSpec((1, 1, 3 * D), lambda b, l: (l, 0, 0)),    # bqkv
        pl.BlockSpec((1, D, D), lambda b, l: (l, 0, 0)),        # wo
        pl.BlockSpec((1, D, F), lambda b, l: (l, 0, 0)),        # w1
        pl.BlockSpec((1, 1, F), lambda b, l: (l, 0, 0)),        # b1
        pl.BlockSpec((1, F, D), lambda b, l: (l, 0, 0)),        # w2
        pl.BlockSpec((1, 8, D), lambda b, l: (l, 0, 0)),        # packed vecs
    ]
    return pl.pallas_call(
        functools.partial(transformer_stack_kernel, num_heads=num_heads),
        out_shape=jax.ShapeDtypeStruct((B, S, D), jnp.float32),
        grid=(nb, L),
        in_specs=in_specs,
        out_specs=pl.BlockSpec((b_tile, S, D), lambda b, l: (b, 0, 0)),
        compiler_params=pltpu.CompilerParams(
            dimension_semantics=("parallel", "arbitrary"),  # megacore on b
            vmem_limit_bytes=48 * 1024 * 1024),             # v7x headroom
    )(x, params["wqkv"], params["bqkv"], params["wo"], params["w1"],
      params["b1"], params["w2"], params["vec"])


def head(cls_tok, params):
    B, D = cls_tok.shape
    C_pad = params["wout_pad"].shape[1]
    out = pl.pallas_call(
        head_kernel,
        out_shape=jax.ShapeDtypeStruct((B, C_pad), jnp.float32),
        grid=(1,),
        in_specs=[
            pl.BlockSpec((B, D), lambda i: (0, 0)),
            pl.BlockSpec((D, D), lambda i: (0, 0)),
            pl.BlockSpec((1, D), lambda i: (0, 0)),
            pl.BlockSpec((D, C_pad), lambda i: (0, 0)),
            pl.BlockSpec((1, C_pad), lambda i: (0, 0)),
        ],
        out_specs=pl.BlockSpec((B, C_pad), lambda i: (0, 0)),
        compiler_params=pltpu.CompilerParams(
            dimension_semantics=("arbitrary",)),
    )(cls_tok, params["wfc"], params["bfc"], params["wout_pad"],
      params["bout_pad"])
    return out[:, :params["num_cls"]]


def bert_forward(tokens, params, num_heads, bert=True):
    # Embedding lookup + positional encoding: glue (gather) in plain JAX.
    x = params["embedding"][tokens]                       # (B, S, D) f32
    x = x + params["pe"][: tokens.shape[1]][None, :, :]
    x = transformer_stack(x, params, num_heads)           # all layers, 1 call
    cls_tok = x[:, 0, :] if bert else jnp.mean(x, axis=1)
    return head(cls_tok, params)


# ----------------------------------------------------------------------------
# Pure-JAX reference (correctness check only; f32 math)
# ----------------------------------------------------------------------------
def _layernorm_ref(y, g, b):
    mu = jnp.mean(y, axis=-1, keepdims=True)
    var = jnp.mean((y - mu) ** 2, axis=-1, keepdims=True)
    return (y - mu) * jax.lax.rsqrt(var + 1e-5) * g + b


def bert_ref(tokens, params, num_heads, bert=True):
    f32 = lambda a: a.astype(jnp.float32)
    x = params["embedding"][tokens]
    x = x + params["pe"][: tokens.shape[1]][None, :, :]
    B, S, D = x.shape
    dh = D // num_heads
    L = params["wqkv"].shape[0]
    for l in range(L):
        qkv = x @ f32(params["wqkv"][l]) + params["bqkv"][l, 0]
        q, k, v = qkv[..., :D], qkv[..., D:2 * D], qkv[..., 2 * D:]
        qh = q.reshape(B, S, num_heads, dh).transpose(0, 2, 1, 3)
        kh = k.reshape(B, S, num_heads, dh).transpose(0, 2, 1, 3)
        vh = v.reshape(B, S, num_heads, dh).transpose(0, 2, 1, 3)
        sc = jnp.einsum("bhqd,bhkd->bhqk", qh, kh) / np.sqrt(dh)
        pr = jax.nn.softmax(sc, axis=-1)
        oh = jnp.einsum("bhqk,bhkd->bhqd", pr, vh)
        oh = oh.transpose(0, 2, 1, 3).reshape(B, S, D)
        vec = params["vec"][l]
        attn = oh @ f32(params["wo"][l]) + vec[0]
        h1 = _layernorm_ref(attn + x, vec[1], vec[2])
        ff = jnp.maximum(h1 @ f32(params["w1"][l]) + params["b1"][l, 0], 0.0)
        ff = ff @ f32(params["w2"][l]) + vec[3]
        x = _layernorm_ref(ff + h1, vec[4], vec[5])
    cls_tok = x[:, 0, :] if bert else jnp.mean(x, axis=1)
    h = cls_tok @ f32(params["wfc"]) + params["bfc"][0]
    out = h @ f32(params["wout_pad"]) + params["bout_pad"][0]
    return out[:, :params["num_cls"]]


# ----------------------------------------------------------------------------
# Deterministic parameter construction
# ----------------------------------------------------------------------------
def sinusoidal_pe(max_len, d):
    pos = np.arange(max_len)[:, None].astype(np.float32)
    div = np.exp(np.arange(0, d, 2).astype(np.float32) * (-np.log(10000.0) / d))
    pe = np.zeros((max_len, d), dtype=np.float32)
    pe[:, 0::2] = np.sin(pos * div)
    pe[:, 1::2] = np.cos(pos * div)
    return jnp.asarray(pe)


def make_params(key, vocab_size, embed_dim, seq_len, n_layers, num_cls):
    D, F = embed_dim, 4 * embed_dim
    keys = iter(jax.random.split(key, 16 * n_layers + 16))

    def w(shape, scale=0.02):
        return (scale * jax.random.normal(next(keys), shape)).astype(jnp.float32)

    wqkv, bqkv, wo, w1, b1, w2, vec = [], [], [], [], [], [], []
    for _ in range(n_layers):
        wq, wk, wv = w((D, D)), w((D, D)), w((D, D))
        wqkv.append(jnp.concatenate([wq, wk, wv], axis=1))   # fused (D, 3D)
        bqkv.append(w((1, 3 * D)))
        wo.append(w((D, D)))
        w1.append(w((D, F)))
        b1.append(w((1, F)))
        w2.append(w((F, D)))
        vec.append(jnp.concatenate([
            w((1, D)),                     # bo
            1.0 + w((1, D)),               # g1
            w((1, D)),                     # be1
            w((1, D)),                     # b2
            1.0 + w((1, D)),               # g2
            w((1, D)),                     # be2
            jnp.zeros((2, D), jnp.float32),
        ], axis=0))                        # (8, D)

    # Pad the classifier projection to 128 lanes once, at build time.
    C_pad = max(128, ((num_cls + 127) // 128) * 128)
    wout = w((D, num_cls))
    bout = w((1, num_cls))
    wout_pad = jnp.zeros((D, C_pad), jnp.float32).at[:, :num_cls].set(wout)
    bout_pad = jnp.zeros((1, C_pad), jnp.float32).at[:, :num_cls].set(bout)

    return dict(
        embedding=w((vocab_size, D), scale=1.0),
        pe=sinusoidal_pe(seq_len + 1, D),
        wqkv=jnp.stack(wqkv).astype(jnp.bfloat16),   # (L, D, 3D)
        bqkv=jnp.stack(bqkv),                        # (L, 1, 3D) f32
        wo=jnp.stack(wo).astype(jnp.bfloat16),       # (L, D, D)
        w1=jnp.stack(w1).astype(jnp.bfloat16),       # (L, D, F)
        b1=jnp.stack(b1),                            # (L, 1, F) f32
        w2=jnp.stack(w2).astype(jnp.bfloat16),       # (L, F, D)
        vec=jnp.stack(vec),                          # (L, 8, D) f32
        wfc=w((D, D)).astype(jnp.bfloat16),
        bfc=w((1, D)),
        wout_pad=wout_pad.astype(jnp.bfloat16),
        bout_pad=bout_pad,
        num_cls=num_cls,
    )


if __name__ == "__main__":
    # Small shapes consistent with the module (scaled down); D=128 keeps all
    # stores lane-dense.
    batch, seq_len, embed_dim, num_heads = 2, 8, 128, 4
    vocab_size, n_layers, num_cls = 100, 2, 10

    key = jax.random.PRNGKey(0)
    pkey, tkey = jax.random.split(key)
    params = make_params(pkey, vocab_size, embed_dim, seq_len, n_layers,
                         num_cls)
    tokens = jax.random.randint(tkey, (batch, seq_len), 0, vocab_size)

    out = bert_forward(tokens, params, num_heads, bert=True)
    out = jax.block_until_ready(out)

    ref = bert_ref(tokens, params, num_heads, bert=True)
    # bf16 matmul operands (f32 accumulation) + approx reciprocal => small
    # numeric drift vs. the f32 reference; tolerance loosened accordingly.
    np.testing.assert_allclose(np.asarray(out), np.asarray(ref),
                               rtol=2e-2, atol=2e-2)
    assert out.shape == (batch, num_cls)
    print("KERNEL_OK")
</pallas_src>

<mosaic_0001>
module attributes {stable_mosaic.version = 11 : i64} {
  func.func @transformer_stack_kernel(%arg0: i32, %arg1: i32, %arg2: memref<2x8x128xf32, #tpu.memory_space<vmem>>, %arg3: memref<1x128x384xbf16, #tpu.memory_space<vmem>>, %arg4: memref<1x1x384xf32, #tpu.memory_space<vmem>>, %arg5: memref<1x128x128xbf16, #tpu.memory_space<vmem>>, %arg6: memref<1x128x512xbf16, #tpu.memory_space<vmem>>, %arg7: memref<1x1x512xf32, #tpu.memory_space<vmem>>, %arg8: memref<1x512x128xbf16, #tpu.memory_space<vmem>>, %arg9: memref<1x8x128xf32, #tpu.memory_space<vmem>>, %arg10: memref<2x8x128xf32, #tpu.memory_space<vmem>>) attributes {dimension_semantics = [#tpu.dimension_semantics<parallel>, #tpu.dimension_semantics<arbitrary>], iteration_bounds = array<i64: 1, 2>, scalar_prefetch = 0 : i64, scratch_operands = 0 : i64, tpu.core_type = #tpu.core_type<tc>, window_params = [{transform_indices = @transform_0, window_bounds = array<i64: 2, 8, 128>}, {transform_indices = @transform_1, window_bounds = array<i64: 1, 128, 384>}, {transform_indices = @transform_2, window_bounds = array<i64: 1, 1, 384>}, {transform_indices = @transform_3, window_bounds = array<i64: 1, 128, 128>}, {transform_indices = @transform_4, window_bounds = array<i64: 1, 128, 512>}, {transform_indices = @transform_5, window_bounds = array<i64: 1, 1, 512>}, {transform_indices = @transform_6, window_bounds = array<i64: 1, 512, 128>}, {transform_indices = @transform_7, window_bounds = array<i64: 1, 8, 128>}, {transform_indices = @transform_8, window_bounds = array<i64: 2, 8, 128>}]} {
    %c0_i32 = arith.constant 0 : i32
    %0 = arith.cmpi eq, %arg1, %c0_i32 : i32
    %1 = arith.extui %0 : i1 to i32
    %c0_i32_0 = arith.constant 0 : i32
    %2 = arith.cmpi ne, %1, %c0_i32_0 : i32
    scf.if %2 {
      %c0_58 = arith.constant 0 : index
      %c0_59 = arith.constant 0 : index
      %c0_60 = arith.constant 0 : index
      %168 = vector.load %arg2[%c0_58, %c0_59, %c0_60] : memref<2x8x128xf32, #tpu.memory_space<vmem>>, vector<2x8x128xf32>
      %c0_61 = arith.constant 0 : index
      %c0_62 = arith.constant 0 : index
      %c0_63 = arith.constant 0 : index
      %169 = vector.load %arg10[%c0_61, %c0_62, %c0_63] : memref<2x8x128xf32, #tpu.memory_space<vmem>>, vector<2x8x128xf32>
      tpu.vector_store %arg10[%c0_61, %c0_62, %c0_63], %168 {strides = array<i32>} : memref<2x8x128xf32, #tpu.memory_space<vmem>>, vector<2x8x128xf32>,
    } else {
    }
    %c0 = arith.constant 0 : index
    %c0_1 = arith.constant 0 : index
    %c0_2 = arith.constant 0 : index
    %3 = vector.load %arg10[%c0, %c0_1, %c0_2] : memref<2x8x128xf32, #tpu.memory_space<vmem>>, vector<2x8x128xf32>
    %4 = vector.shape_cast %3 : vector<2x8x128xf32> to vector<16x128xf32>
    %5 = arith.truncf %4 : vector<16x128xf32> to vector<16x128xbf16>
    %c0_3 = arith.constant 0 : index
    %c0_4 = arith.constant 0 : index
    %c0_5 = arith.constant 0 : index
    %6 = vector.load %arg3[%c0_3, %c0_4, %c0_5] : memref<1x128x384xbf16, #tpu.memory_space<vmem>>, vector<1x128x384xbf16>
    %7 = vector.shape_cast %6 : vector<1x128x384xbf16> to vector<128x384xbf16>
    %cst = arith.constant dense<0.000000e+00> : vector<16x384xf32>
    %8 = tpu.matmul %5, %7, %cst {dimension_numbers = #tpu.dot_dimension_numbers<[1], [0], [0], [1], [0, 0, 1, 1], [], []>} : vector<16x128xbf16>, vector<128x384xbf16>, vector<16x384xf32> -> vector<16x384xf32>
    %c0_6 = arith.constant 0 : index
    %c0_7 = arith.constant 0 : index
    %c0_8 = arith.constant 0 : index
    %9 = vector.load %arg4[%c0_6, %c0_7, %c0_8] : memref<1x1x384xf32, #tpu.memory_space<vmem>>, vector<1x1x384xf32>
    %10 = vector.shape_cast %9 : vector<1x1x384xf32> to vector<1x384xf32>
    %11 = vector.broadcast %10 : vector<1x384xf32> to vector<16x384xf32>
    %12 = arith.addf %8, %11 : vector<16x384xf32>
    %13 = vector.extract_strided_slice %12 {offsets = [0, 0], sizes = [16, 128], strides = [1, 1]} : vector<16x384xf32> to vector<16x128xf32>
    %cst_9 = arith.constant 0.176776692 : f32
    %14 = vector.broadcast %cst_9 : f32 to vector<16x128xf32>
    %15 = arith.mulf %13, %14 : vector<16x128xf32>
    %16 = arith.truncf %15 : vector<16x128xf32> to vector<16x128xbf16>
    %17 = vector.shape_cast %16 : vector<16x128xbf16> to vector<2x8x128xbf16>
    %18 = vector.extract_strided_slice %12 {offsets = [0, 128], sizes = [16, 128], strides = [1, 1]} : vector<16x384xf32> to vector<16x128xf32>
    %19 = arith.truncf %18 : vector<16x128xf32> to vector<16x128xbf16>
    %20 = vector.shape_cast %19 : vector<16x128xbf16> to vector<2x8x128xbf16>
    %21 = vector.extract_strided_slice %12 {offsets = [0, 256], sizes = [16, 128], strides = [1, 1]} : vector<16x384xf32> to vector<16x128xf32>
    %22 = arith.truncf %21 : vector<16x128xf32> to vector<16x128xbf16>
    %23 = vector.shape_cast %22 : vector<16x128xbf16> to vector<2x8x128xbf16>
    %24 = vector.extract_strided_slice %17 {offsets = [0, 0, 0], sizes = [2, 8, 32], strides = [1, 1, 1]} : vector<2x8x128xbf16> to vector<2x8x32xbf16>
    %25 = vector.extract_strided_slice %20 {offsets = [0, 0, 0], sizes = [2, 8, 32], strides = [1, 1, 1]} : vector<2x8x128xbf16> to vector<2x8x32xbf16>
    %26 = vector.extract_strided_slice %23 {offsets = [0, 0, 0], sizes = [2, 8, 32], strides = [1, 1, 1]} : vector<2x8x128xbf16> to vector<2x8x32xbf16>
    "tpu.trace_start"() <{level = 10 : i32, message = "bqd,bkd->bqk"}> : () -> ()
    %cst_10 = arith.constant dense<0.000000e+00> : vector<2x8x8xf32>
    %27 = tpu.matmul %24, %25, %cst_10 {dimension_numbers = #tpu.dot_dimension_numbers<[2], [2], [1], [1], [0, 0, 0, 1, 1, 1], [0], [0]>} : vector<2x8x32xbf16>, vector<2x8x32xbf16>, vector<2x8x8xf32> -> vector<2x8x8xf32>
    "tpu.trace_stop"() : () -> ()
    %cst_11 = arith.constant dense<0xFF800000> : vector<2x8xf32>
    %28 = vector.multi_reduction <maximumf>, %27, %cst_11 [2] : vector<2x8x8xf32> to vector<2x8xf32>
    %29 = vector.shape_cast %28 : vector<2x8xf32> to vector<2x8x1xf32>
    %30 = vector.broadcast %29 : vector<2x8x1xf32> to vector<2x8x8xf32>
    %31 = arith.subf %27, %30 : vector<2x8x8xf32>
    %32 = math.exp %31 : vector<2x8x8xf32>
    %cst_12 = arith.constant dense<0.000000e+00> : vector<2x8xf32>
    %33 = vector.multi_reduction <add>, %32, %cst_12 [2] : vector<2x8x8xf32> to vector<2x8xf32>
    %34 = vector.shape_cast %33 : vector<2x8xf32> to vector<2x8x1xf32>
    %35 = tpu.reciprocal %34 {approx = true} : vector<2x8x1xf32> -> vector<2x8x1xf32>
    %36 = vector.broadcast %35 : vector<2x8x1xf32> to vector<2x8x8xf32>
    %37 = arith.mulf %32, %36 : vector<2x8x8xf32>
    %38 = arith.truncf %37 : vector<2x8x8xf32> to vector<2x8x8xbf16>
    "tpu.trace_start"() <{level = 10 : i32, message = "bqk,bkd->bqd"}> : () -> ()
    %cst_13 = arith.constant dense<0.000000e+00> : vector<2x8x32xf32>
    %39 = tpu.matmul %38, %26, %cst_13 {dimension_numbers = #tpu.dot_dimension_numbers<[2], [1], [1], [2], [0, 0, 0, 1, 1, 2], [0], [0]>} : vector<2x8x8xbf16>, vector<2x8x32xbf16>, vector<2x8x32xf32> -> vector<2x8x32xf32>
    "tpu.trace_stop"() : () -> ()
    %40 = vector.extract_strided_slice %17 {offsets = [0, 0, 32], sizes = [2, 8, 32], strides = [1, 1, 1]} : vector<2x8x128xbf16> to vector<2x8x32xbf16>
    %41 = vector.extract_strided_slice %20 {offsets = [0, 0, 32], sizes = [2, 8, 32], strides = [1, 1, 1]} : vector<2x8x128xbf16> to vector<2x8x32xbf16>
    %42 = vector.extract_strided_slice %23 {offsets = [0, 0, 32], sizes = [2, 8, 32], strides = [1, 1, 1]} : vector<2x8x128xbf16> to vector<2x8x32xbf16>
    "tpu.trace_start"() <{level = 10 : i32, message = "bqd,bkd->bqk"}> : () -> ()
    %cst_14 = arith.constant dense<0.000000e+00> : vector<2x8x8xf32>
    %43 = tpu.matmul %40, %41, %cst_14 {dimension_numbers = #tpu.dot_dimension_numbers<[2], [2], [1], [1], [0, 0, 0, 1, 1, 1], [0], [0]>} : vector<2x8x32xbf16>, vector<2x8x32xbf16>, vector<2x8x8xf32> -> vector<2x8x8xf32>
    "tpu.trace_stop"() : () -> ()
    %cst_15 = arith.constant dense<0xFF800000> : vector<2x8xf32>
    %44 = vector.multi_reduction <maximumf>, %43, %cst_15 [2] : vector<2x8x8xf32> to vector<2x8xf32>
    %45 = vector.shape_cast %44 : vector<2x8xf32> to vector<2x8x1xf32>
    %46 = vector.broadcast %45 : vector<2x8x1xf32> to vector<2x8x8xf32>
    %47 = arith.subf %43, %46 : vector<2x8x8xf32>
    %48 = math.exp %47 : vector<2x8x8xf32>
    %cst_16 = arith.constant dense<0.000000e+00> : vector<2x8xf32>
    %49 = vector.multi_reduction <add>, %48, %cst_16 [2] : vector<2x8x8xf32> to vector<2x8xf32>
    %50 = vector.shape_cast %49 : vector<2x8xf32> to vector<2x8x1xf32>
    %51 = tpu.reciprocal %50 {approx = true} : vector<2x8x1xf32> -> vector<2x8x1xf32>
    %52 = vector.broadcast %51 : vector<2x8x1xf32> to vector<2x8x8xf32>
    %53 = arith.mulf %48, %52 : vector<2x8x8xf32>
    %54 = arith.truncf %53 : vector<2x8x8xf32> to vector<2x8x8xbf16>
    "tpu.trace_start"() <{level = 10 : i32, message = "bqk,bkd->bqd"}> : () -> ()
    %cst_17 = arith.constant dense<0.000000e+00> : vector<2x8x32xf32>
    %55 = tpu.matmul %54, %42, %cst_17 {dimension_numbers = #tpu.dot_dimension_numbers<[2], [1], [1], [2], [0, 0, 0, 1, 1, 2], [0], [0]>} : vector<2x8x8xbf16>, vector<2x8x32xbf16>, vector<2x8x32xf32> -> vector<2x8x32xf32>
    "tpu.trace_stop"() : () -> ()
    %56 = vector.extract_strided_slice %17 {offsets = [0, 0, 64], sizes = [2, 8, 32], strides = [1, 1, 1]} : vector<2x8x128xbf16> to vector<2x8x32xbf16>
    %57 = vector.extract_strided_slice %20 {offsets = [0, 0, 64], sizes = [2, 8, 32], strides = [1, 1, 1]} : vector<2x8x128xbf16> to vector<2x8x32xbf16>
    %58 = vector.extract_strided_slice %23 {offsets = [0, 0, 64], sizes = [2, 8, 32], strides = [1, 1, 1]} : vector<2x8x128xbf16> to vector<2x8x32xbf16>
    "tpu.trace_start"() <{level = 10 : i32, message = "bqd,bkd->bqk"}> : () -> ()
    %cst_18 = arith.constant dense<0.000000e+00> : vector<2x8x8xf32>
    %59 = tpu.matmul %56, %57, %cst_18 {dimension_numbers = #tpu.dot_dimension_numbers<[2], [2], [1], [1], [0, 0, 0, 1, 1, 1], [0], [0]>} : vector<2x8x32xbf16>, vector<2x8x32xbf16>, vector<2x8x8xf32> -> vector<2x8x8xf32>
    "tpu.trace_stop"() : () -> ()
    %cst_19 = arith.constant dense<0xFF800000> : vector<2x8xf32>
    %60 = vector.multi_reduction <maximumf>, %59, %cst_19 [2] : vector<2x8x8xf32> to vector<2x8xf32>
    %61 = vector.shape_cast %60 : vector<2x8xf32> to vector<2x8x1xf32>
    %62 = vector.broadcast %61 : vector<2x8x1xf32> to vector<2x8x8xf32>
    %63 = arith.subf %59, %62 : vector<2x8x8xf32>
    %64 = math.exp %63 : vector<2x8x8xf32>
    %cst_20 = arith.constant dense<0.000000e+00> : vector<2x8xf32>
    %65 = vector.multi_reduction <add>, %64, %cst_20 [2] : vector<2x8x8xf32> to vector<2x8xf32>
    %66 = vector.shape_cast %65 : vector<2x8xf32> to vector<2x8x1xf32>
    %67 = tpu.reciprocal %66 {approx = true} : vector<2x8x1xf32> -> vector<2x8x1xf32>
    %68 = vector.broadcast %67 : vector<2x8x1xf32> to vector<2x8x8xf32>
    %69 = arith.mulf %64, %68 : vector<2x8x8xf32>
    %70 = arith.truncf %69 : vector<2x8x8xf32> to vector<2x8x8xbf16>
    "tpu.trace_start"() <{level = 10 : i32, message = "bqk,bkd->bqd"}> : () -> ()
    %cst_21 = arith.constant dense<0.000000e+00> : vector<2x8x32xf32>
    %71 = tpu.matmul %70, %58, %cst_21 {dimension_numbers = #tpu.dot_dimension_numbers<[2], [1], [1], [2], [0, 0, 0, 1, 1, 2], [0], [0]>} : vector<2x8x8xbf16>, vector<2x8x32xbf16>, vector<2x8x32xf32> -> vector<2x8x32xf32>
    "tpu.trace_stop"() : () -> ()
    %72 = vector.extract_strided_slice %17 {offsets = [0, 0, 96], sizes = [2, 8, 32], strides = [1, 1, 1]} : vector<2x8x128xbf16> to vector<2x8x32xbf16>
    %73 = vector.extract_strided_slice %20 {offsets = [0, 0, 96], sizes = [2, 8, 32], strides = [1, 1, 1]} : vector<2x8x128xbf16> to vector<2x8x32xbf16>
    %74 = vector.extract_strided_slice %23 {offsets = [0, 0, 96], sizes = [2, 8, 32], strides = [1, 1, 1]} : vector<2x8x128xbf16> to vector<2x8x32xbf16>
    "tpu.trace_start"() <{level = 10 : i32, message = "bqd,bkd->bqk"}> : () -> ()
    %cst_22 = arith.constant dense<0.000000e+00> : vector<2x8x8xf32>
    %75 = tpu.matmul %72, %73, %cst_22 {dimension_numbers = #tpu.dot_dimension_numbers<[2], [2], [1], [1], [0, 0, 0, 1, 1, 1], [0], [0]>} : vector<2x8x32xbf16>, vector<2x8x32xbf16>, vector<2x8x8xf32> -> vector<2x8x8xf32>
    "tpu.trace_stop"() : () -> ()
    %cst_23 = arith.constant dense<0xFF800000> : vector<2x8xf32>
    %76 = vector.multi_reduction <maximumf>, %75, %cst_23 [2] : vector<2x8x8xf32> to vector<2x8xf32>
    %77 = vector.shape_cast %76 : vector<2x8xf32> to vector<2x8x1xf32>
    %78 = vector.broadcast %77 : vector<2x8x1xf32> to vector<2x8x8xf32>
    %79 = arith.subf %75, %78 : vector<2x8x8xf32>
    %80 = math.exp %79 : vector<2x8x8xf32>
    %cst_24 = arith.constant dense<0.000000e+00> : vector<2x8xf32>
    %81 = vector.multi_reduction <add>, %80, %cst_24 [2] : vector<2x8x8xf32> to vector<2x8xf32>
    %82 = vector.shape_cast %81 : vector<2x8xf32> to vector<2x8x1xf32>
    %83 = tpu.reciprocal %82 {approx = true} : vector<2x8x1xf32> -> vector<2x8x1xf32>
    %84 = vector.broadcast %83 : vector<2x8x1xf32> to vector<2x8x8xf32>
    %85 = arith.mulf %80, %84 : vector<2x8x8xf32>
    %86 = arith.truncf %85 : vector<2x8x8xf32> to vector<2x8x8xbf16>
    "tpu.trace_start"() <{level = 10 : i32, message = "bqk,bkd->bqd"}> : () -> ()
    %cst_25 = arith.constant dense<0.000000e+00> : vector<2x8x32xf32>
    %87 = tpu.matmul %86, %74, %cst_25 {dimension_numbers = #tpu.dot_dimension_numbers<[2], [1], [1], [2], [0, 0, 0, 1, 1, 2], [0], [0]>} : vector<2x8x8xbf16>, vector<2x8x32xbf16>, vector<2x8x32xf32> -> vector<2x8x32xf32>
    "tpu.trace_stop"() : () -> ()
    %88 = tpu.concatenate %39, %55, %71, %87 in 2 : vector<2x8x32xf32>, vector<2x8x32xf32>, vector<2x8x32xf32>, vector<2x8x32xf32> -> vector<2x8x128xf32>
    %89 = vector.shape_cast %88 : vector<2x8x128xf32> to vector<16x128xf32>
    %c0_26 = arith.constant 0 : index
    %c0_27 = arith.constant 0 : index
    %c0_28 = arith.constant 0 : index
    %90 = vector.load %arg9[%c0_26, %c0_27, %c0_28] : memref<1x8x128xf32, #tpu.memory_space<vmem>>, vector<1x8x128xf32>
    %91 = vector.shape_cast %90 : vector<1x8x128xf32> to vector<8x128xf32>
    %92 = vector.extract_strided_slice %91 {offsets = [0, 0], sizes = [1, 128], strides = [1, 1]} : vector<8x128xf32> to vector<1x128xf32>
    %93 = vector.extract_strided_slice %91 {offsets = [1, 0], sizes = [1, 128], strides = [1, 1]} : vector<8x128xf32> to vector<1x128xf32>
    %94 = vector.extract_strided_slice %91 {offsets = [2, 0], sizes = [1, 128], strides = [1, 1]} : vector<8x128xf32> to vector<1x128xf32>
    %95 = vector.extract_strided_slice %91 {offsets = [3, 0], sizes = [1, 128], strides = [1, 1]} : vector<8x128xf32> to vector<1x128xf32>
    %96 = vector.extract_strided_slice %91 {offsets = [4, 0], sizes = [1, 128], strides = [1, 1]} : vector<8x128xf32> to vector<1x128xf32>
    %97 = vector.extract_strided_slice %91 {offsets = [5, 0], sizes = [1, 128], strides = [1, 1]} : vector<8x128xf32> to vector<1x128xf32>
    %98 = arith.truncf %89 : vector<16x128xf32> to vector<16x128xbf16>
    %c0_29 = arith.constant 0 : index
    %c0_30 = arith.constant 0 : index
    %c0_31 = arith.constant 0 : index
    %99 = vector.load %arg5[%c0_29, %c0_30, %c0_31] : memref<1x128x128xbf16, #tpu.memory_space<vmem>>, vector<1x128x128xbf16>
    %100 = vector.shape_cast %99 : vector<1x128x128xbf16> to vector<128x128xbf16>
    %cst_32 = arith.constant dense<0.000000e+00> : vector<16x128xf32>
    %101 = tpu.matmul %98, %100, %cst_32 {dimension_numbers = #tpu.dot_dimension_numbers<[1], [0], [0], [1], [0, 0, 1, 1], [], []>} : vector<16x128xbf16>, vector<128x128xbf16>, vector<16x128xf32> -> vector<16x128xf32>
    %102 = vector.broadcast %92 : vector<1x128xf32> to vector<16x128xf32>
    %103 = arith.addf %101, %102 : vector<16x128xf32>
    %104 = arith.addf %103, %4 : vector<16x128xf32>
    %cst_33 = arith.constant dense<0.000000e+00> : vector<16xf32>
    %105 = vector.multi_reduction <add>, %104, %cst_33 [1] : vector<16x128xf32> to vector<16xf32>
    %106 = vector.shape_cast %105 : vector<16xf32> to vector<16x1xf32>
    %cst_34 = arith.constant 1.280000e+02 : f32
    %107 = vector.broadcast %cst_34 : f32 to vector<16x1xf32>
    %108 = arith.divf %106, %107 : vector<16x1xf32>
    %109 = vector.broadcast %108 : vector<16x1xf32> to vector<16x128xf32>
    %110 = arith.subf %104, %109 : vector<16x128xf32>
    %111 = arith.mulf %110, %110 : vector<16x128xf32>
    %cst_35 = arith.constant dense<0.000000e+00> : vector<16xf32>
    %112 = vector.multi_reduction <add>, %111, %cst_35 [1] : vector<16x128xf32> to vector<16xf32>
    %113 = vector.shape_cast %112 : vector<16xf32> to vector<16x1xf32>
    %cst_36 = arith.constant 1.280000e+02 : f32
    %114 = vector.broadcast %cst_36 : f32 to vector<16x1xf32>
    %115 = arith.divf %113, %114 : vector<16x1xf32>
    %116 = vector.broadcast %108 : vector<16x1xf32> to vector<16x128xf32>
    %117 = arith.subf %104, %116 : vector<16x128xf32>
    %cst_37 = arith.constant 9.99999974E-6 : f32
    %118 = vector.broadcast %cst_37 : f32 to vector<16x1xf32>
    %119 = arith.addf %115, %118 : vector<16x1xf32>
    %120 = math.rsqrt %119 : vector<16x1xf32>
    %121 = vector.broadcast %120 : vector<16x1xf32> to vector<16x128xf32>
    %122 = arith.mulf %117, %121 : vector<16x128xf32>
    %123 = vector.broadcast %93 : vector<1x128xf32> to vector<16x128xf32>
    %124 = arith.mulf %122, %123 : vector<16x128xf32>
    %125 = vector.broadcast %94 : vector<1x128xf32> to vector<16x128xf32>
    %126 = arith.addf %124, %125 : vector<16x128xf32>
    %127 = arith.truncf %126 : vector<16x128xf32> to vector<16x128xbf16>
    %c0_38 = arith.constant 0 : index
    %c0_39 = arith.constant 0 : index
    %c0_40 = arith.constant 0 : index
    %128 = vector.load %arg6[%c0_38, %c0_39, %c0_40] : memref<1x128x512xbf16, #tpu.memory_space<vmem>>, vector<1x128x512xbf16>
    %129 = vector.shape_cast %128 : vector<1x128x512xbf16> to vector<128x512xbf16>
    %cst_41 = arith.constant dense<0.000000e+00> : vector<16x512xf32>
    %130 = tpu.matmul %127, %129, %cst_41 {dimension_numbers = #tpu.dot_dimension_numbers<[1], [0], [0], [1], [0, 0, 1, 1], [], []>} : vector<16x128xbf16>, vector<128x512xbf16>, vector<16x512xf32> -> vector<16x512xf32>
    %c0_42 = arith.constant 0 : index
    %c0_43 = arith.constant 0 : index
    %c0_44 = arith.constant 0 : index
    %131 = vector.load %arg7[%c0_42, %c0_43, %c0_44] : memref<1x1x512xf32, #tpu.memory_space<vmem>>, vector<1x1x512xf32>
    %132 = vector.shape_cast %131 : vector<1x1x512xf32> to vector<1x512xf32>
    %133 = vector.broadcast %132 : vector<1x512xf32> to vector<16x512xf32>
    %134 = arith.addf %130, %133 : vector<16x512xf32>
    %cst_45 = arith.constant 0.000000e+00 : f32
    %135 = vector.broadcast %cst_45 : f32 to vector<16x512xf32>
    %136 = arith.maximumf %134, %135 : vector<16x512xf32>
    %137 = arith.truncf %136 : vector<16x512xf32> to vector<16x512xbf16>
    %c0_46 = arith.constant 0 : index
    %c0_47 = arith.constant 0 : index
    %c0_48 = arith.constant 0 : index
    %138 = vector.load %arg8[%c0_46, %c0_47, %c0_48] : memref<1x512x128xbf16, #tpu.memory_space<vmem>>, vector<1x512x128xbf16>
    %139 = vector.shape_cast %138 : vector<1x512x128xbf16> to vector<512x128xbf16>
    %cst_49 = arith.constant dense<0.000000e+00> : vector<16x128xf32>
    %140 = tpu.matmul %137, %139, %cst_49 {dimension_numbers = #tpu.dot_dimension_numbers<[1], [0], [0], [1], [0, 0, 1, 1], [], []>} : vector<16x512xbf16>, vector<512x128xbf16>, vector<16x128xf32> -> vector<16x128xf32>
    %141 = vector.broadcast %95 : vector<1x128xf32> to vector<16x128xf32>
    %142 = arith.addf %140, %141 : vector<16x128xf32>
    %143 = arith.addf %142, %126 : vector<16x128xf32>
    %cst_50 = arith.constant dense<0.000000e+00> : vector<16xf32>
    %144 = vector.multi_reduction <add>, %143, %cst_50 [1] : vector<16x128xf32> to vector<16xf32>
    %145 = vector.shape_cast %144 : vector<16xf32> to vector<16x1xf32>
    %cst_51 = arith.constant 1.280000e+02 : f32
    %146 = vector.broadcast %cst_51 : f32 to vector<16x1xf32>
    %147 = arith.divf %145, %146 : vector<16x1xf32>
    %148 = vector.broadcast %147 : vector<16x1xf32> to vector<16x128xf32>
    %149 = arith.subf %143, %148 : vector<16x128xf32>
    %150 = arith.mulf %149, %149 : vector<16x128xf32>
    %cst_52 = arith.constant dense<0.000000e+00> : vector<16xf32>
    %151 = vector.multi_reduction <add>, %150, %cst_52 [1] : vector<16x128xf32> to vector<16xf32>
    %152 = vector.shape_cast %151 : vector<16xf32> to vector<16x1xf32>
    %cst_53 = arith.constant 1.280000e+02 : f32
    %153 = vector.broadcast %cst_53 : f32 to vector<16x1xf32>
    %154 = arith.divf %152, %153 : vector<16x1xf32>
    %155 = vector.broadcast %147 : vector<16x1xf32> to vector<16x128xf32>
    %156 = arith.subf %143, %155 : vector<16x128xf32>
    %cst_54 = arith.constant 9.99999974E-6 : f32
    %157 = vector.broadcast %cst_54 : f32 to vector<16x1xf32>
    %158 = arith.addf %154, %157 : vector<16x1xf32>
    %159 = math.rsqrt %158 : vector<16x1xf32>
    %160 = vector.broadcast %159 : vector<16x1xf32> to vector<16x128xf32>
    %161 = arith.mulf %156, %160 : vector<16x128xf32>
    %162 = vector.broadcast %96 : vector<1x128xf32> to vector<16x128xf32>
    %163 = arith.mulf %161, %162 : vector<16x128xf32>
    %164 = vector.broadcast %97 : vector<1x128xf32> to vector<16x128xf32>
    %165 = arith.addf %163, %164 : vector<16x128xf32>
    %166 = vector.shape_cast %165 : vector<16x128xf32> to vector<2x8x128xf32>
    %c0_55 = arith.constant 0 : index
    %c0_56 = arith.constant 0 : index
    %c0_57 = arith.constant 0 : index
    %167 = vector.load %arg10[%c0_55, %c0_56, %c0_57] : memref<2x8x128xf32, #tpu.memory_space<vmem>>, vector<2x8x128xf32>
    tpu.vector_store %arg10[%c0_55, %c0_56, %c0_57], %166 {strides = array<i32>} : memref<2x8x128xf32, #tpu.memory_space<vmem>>, vector<2x8x128xf32>,
    return
  }
  func.func @transform_0(%arg0: i32, %arg1: i32) -> (i32, i32, i32) {
    %c0_i32 = arith.constant 0 : i32
    %c0_i32_0 = arith.constant 0 : i32
    %c0_i32_1 = arith.constant 0 : i32
    return %arg0, %c0_i32, %c0_i32_0 : i32, i32, i32
  }
  func.func @transform_1(%arg0: i32, %arg1: i32) -> (i32, i32, i32) {
    %c0_i32 = arith.constant 0 : i32
    %c0_i32_0 = arith.constant 0 : i32
    %c0_i32_1 = arith.constant 0 : i32
    return %arg1, %c0_i32, %c0_i32_0 : i32, i32, i32
  }
  func.func @transform_2(%arg0: i32, %arg1: i32) -> (i32, i32, i32) {
    %c0_i32 = arith.constant 0 : i32
    %c0_i32_0 = arith.constant 0 : i32
    %c0_i32_1 = arith.constant 0 : i32
    return %arg1, %c0_i32, %c0_i32_0 : i32, i32, i32
  }
  func.func @transform_3(%arg0: i32, %arg1: i32) -> (i32, i32, i32) {
    %c0_i32 = arith.constant 0 : i32
    %c0_i32_0 = arith.constant 0 : i32
    %c0_i32_1 = arith.constant 0 : i32
    return %arg1, %c0_i32, %c0_i32_0 : i32, i32, i32
  }
  func.func @transform_4(%arg0: i32, %arg1: i32) -> (i32, i32, i32) {
    %c0_i32 = arith.constant 0 : i32
    %c0_i32_0 = arith.constant 0 : i32
    %c0_i32_1 = arith.constant 0 : i32
    return %arg1, %c0_i32, %c0_i32_0 : i32, i32, i32
  }
  func.func @transform_5(%arg0: i32, %arg1: i32) -> (i32, i32, i32) {
    %c0_i32 = arith.constant 0 : i32
    %c0_i32_0 = arith.constant 0 : i32
    %c0_i32_1 = arith.constant 0 : i32
    return %arg1, %c0_i32, %c0_i32_0 : i32, i32, i32
  }
  func.func @transform_6(%arg0: i32, %arg1: i32) -> (i32, i32, i32) {
    %c0_i32 = arith.constant 0 : i32
    %c0_i32_0 = arith.constant 0 : i32
    %c0_i32_1 = arith.constant 0 : i32
    return %arg1, %c0_i32, %c0_i32_0 : i32, i32, i32
  }
  func.func @transform_7(%arg0: i32, %arg1: i32) -> (i32, i32, i32) {
    %c0_i32 = arith.constant 0 : i32
    %c0_i32_0 = arith.constant 0 : i32
    %c0_i32_1 = arith.constant 0 : i32
    return %arg1, %c0_i32, %c0_i32_0 : i32, i32, i32
  }
  func.func @transform_8(%arg0: i32, %arg1: i32) -> (i32, i32, i32) {
    %c0_i32 = arith.constant 0 : i32
    %c0_i32_0 = arith.constant 0 : i32
    %c0_i32_1 = arith.constant 0 : i32
    return %arg0, %c0_i32, %c0_i32_0 : i32, i32, i32
  }
}

</mosaic_0001>

<bundles_post_ra>
// kernel: tpu_custom_call.1
= control target key start
LH: loop header
LB: loop body
LE: loop exit
PB: predicated region body
PF: predicated region fallthrough
CT: control target
= control target key end

     0   :  { %s4498_s0 = inlined_call_operand.hbm [shape: f32[2,8,128], index: 0, kind: input, shape index: {}]   ;;  %s4499_s1 = inlined_call_operand.hbm [shape: bf16[2,128,384], index: 1, kind: input, shape index: {}]   ;;  %s4500_s2 = inlined_call_operand.hbm [shape: f32[2,1,384], index: 2, kind: input, shape index: {}]   ;;  %s4501_s3 = inlined_call_operand.hbm [shape: bf16[2,128,128], index: 3, kind: input, shape index: {}]   ;;  %s4502_s4 = inlined_call_operand.hbm [shape: bf16[2,128,512], index: 4, kind: input, shape index: {}]   ;;  %s4503_s5 = inlined_call_operand.vmem [shape: f32[2,1,512], index: 5, kind: input, shape index: {}]   ;;  %s4504_s6 = inlined_call_operand.hbm [shape: bf16[2,512,128], index: 6, kind: input, shape index: {}]   ;;  %s4505_s7 = inlined_call_operand.vmem [shape: f32[2,8,128], index: 7, kind: input, shape index: {}]   ;;  %s4506_s8 = inlined_call_operand.hbm [shape: f32[2,8,128], index: 8, kind: output, shape index: {}]  }
   0x1   :  { %4521 = sst [smem:[#allocation23_spill]] %s4499_s1 }
   0x2   :  { %4522 = sst [smem:[#allocation24_spill]] %s4501_s3 }
   0x3   :  { %4523 = sst [smem:[#allocation25_spill]] %s4503_s5 }
   0x4   :  { %4524 = sst [smem:[#allocation26_spill]] %s4505_s7 }
   0x5   :  { %4525 = sst [smem:[#allocation27_spill]] %s4506_s8 }
   0x6   :  { %13 = vsyncpa [#allocation3], 0 }
   0x7   :  { %14 = vsyncpa [#allocation6], 0 }
   0x8   :  { %16 = vsyncpa [#allocation6 + $0x1], 0 }
   0x9   :  { %17 = vsyncpa [#allocation9], 0 }
   0xa   :  { %19 = vsyncpa [#allocation9 + $0x1], 0 }
   0xb   :  { %20 = vsyncpa [#allocation12], 0 }
   0xc   :  { %22 = vsyncpa [#allocation12 + $0x1], 0 }
   0xd   :  { %23 = vsyncpa [#allocation4], 0  ;;  %s3788_s27 = smov 0   ;;  %s3790_s28 = smov 0  }
   0xe   :  { %s3792_s29 = smov 0   ;;  %s3794_s30 = smov 0  }
   0xf   :  { %s3796_s9 = smov 0   ;;  %s3798_s10 = smov 0  }
  0x10 LB: > { %4526 = sst [smem:[#allocation19_spill]] %s3706_s29  ;;  %s38_s11 = sadd.s32 1, %s3714_s9  ;;  %s3718_s10 = sphi %s3798_s10, %s29_s10   ;;  %s3714_s9 = sphi %s3796_s9, %s4559_s9   ;;  %s3710_s30 = sphi %s3794_s30, %s4558_s30   ;;  %s3706_s29 = sphi %s3792_s29, %s4554_s29   ;;  %s3702_s28 = sphi %s3790_s28, %s4557_s28   ;;  %s3698_s27 = sphi %s3788_s27, %s4556_s27  }
  0x11   : > { %4527 = sst [smem:[#allocation20_spill]] %s3718_s10  ;;  %s74_s12 = sadd.s32 1, %s3706_s29 }
  0x12   : > { %p39_p0 = scmp.ge.s32.totalorder %s38_s11, 2  ;;  %p81_p1 = scmp.ne.s32.totalorder %s3706_s29, %s3702_s28 }
  0x13   : > { %p82_p2 = scmp.eq.s32.totalorder %s3718_s10, 0  ;;  %p3203_p4 = scmp.lt.s32.totalorder %s3718_s10, 2 }
  0x14   : > { %s4561_s11 = smov (%p39_p0, %s38_s11), 0  ;;  %s4507_s14 = sand.u32 1, %s3718_s10  }
  0x15   : > { %4528 = sst [smem:[#allocation21_spill]] %s4561_s11  ;;  %p83_p3 = por %p82_p2, %p81_p1 }
  0x16   : > { %s71_s13 = ssub.s32 %s3714_s9, %s4561_s11  ;;  %s3830_s15 = sand.u32 1, %s3706_s29  }
  0x17   : > { %p72_p5 = scmp.eq.s32.totalorder %s71_s13, 0  ;;  %s3159_s16 = smul.u32 3072, %s3714_s9 }
  0x18   : > { %s3158_s18 = smul.u32 192, %s3830_s15  ;;  %s4530_s1 = sld [smem:[#allocation23_spill]] }
  0x19   : > { %s3834_s17 = scalar_select %p72_p5, %s3706_s29, %s74_s12  }
  0x1a   : > { %p3842_p6 = pnand %p3203_p4, %p83_p3  ;;  %s313_s23 = scalar_lea.vmem [#allocation5], %s3158_s18 }
  0x1b   : > { %4529 = sst [smem:[#allocation22_spill]] %s3834_s17  ;;  %s320_s24 = sshll.u32 %s313_s23, 4  ;;  %s3846_s24 = int_to_ptr.vmem [resolvable:$true] %s320_s24 }
  0x1c   : > { %s4531_s22 = scalar_select %p3842_p6, 1, 0 }
  0x1d   : > { %s3850_s25 = scalar_lea.sflag [#allocation6], %s4507_s14  ;;  %p3856_p8 = pneg %p3842_p6 }
  0x1e   : > { %s3840_s21 = scalar_lea.hbm %s4530_s1, %s3159_s16  ;;  %s3453_s18 = scalar_lea.hbm %s4530_s1, 6144 }
  0x1f   : > { %s3448_s26 = scalar_lea.hbm %s3840_s21, 3072  ;;  %p3454_p11 = scmp.lt.u32.totalorder %s3840_s21, %s4530_s1 }
  0x20   : > { %p3449_p7 = scmp.ne.s32.totalorder %s3840_s21, %s3448_s26  ;;  %p3455_p12 = scmp.lt.u32.totalorder %s3453_s18, %s3448_s26 }
  0x21   : > { %s4532_s12 = scalar_select %p3856_p8, 1, 0 }
  0x22   : > { %p3451_p9 = pnand %p3856_p8, %p3449_p7  ;;  %p3456_p13 = por %p3455_p12, %p3454_p11 }
  0x23   : > { %p3457_p0 = scmp.lt.u32.totalorder %s3448_s26, %s3840_s21 }
  0x24   : > { %p3452_p10 = pneg %p3451_p9 }
  0x25   : > { %p3458_p1 = por %p3457_p0, %p3456_p13 }
  0x27   : > { %p3459_p2 = pnand %p3458_p1, %p3452_p10 }
  0x29   : > { %3462 = shalt.err (!%p3459_p2)
}
  0x2a   : > { %s3463_s23 = scalar_lea.vmem %s3846_s24, 3072  ;;  %s3720_s13 = smov [#allocation5]  }
  0x2b   : > { %p3464_p3 = scmp.ne.s32.totalorder %s3846_s24, %s3463_s23  ;;  %s3468_s16 = sshll.u32 %s3720_s13, 4  ;;  %s3469_s16 = int_to_ptr.vmem [resolvable:$false] %s3468_s16 }
  0x2c   : > { %s3470_s19 = scalar_lea.vmem %s3469_s16, 6144  ;;  %p3471_p7 = scmp.lt.s32.totalorder %s3846_s24, %s3469_s16 }
  0x2d   : > { %p3466_p4 = pnand %p3464_p3, %p3856_p8  ;;  %p3472_p9 = scmp.lt.s32.totalorder %s3470_s19, %s3463_s23 }
  0x2f   : > { %p3467_p5 = pneg %p3466_p4  ;;  %p3473_p11 = por %p3472_p9, %p3471_p7 }
  0x31   : > { %p3474_p12 = pnand %p3473_p11, %p3467_p5 }
  0x33   : > { %3477 = shalt.err (!%p3474_p12)
}
  0x34   : > { %s3721_s26 = smov 192   ;;  %s3722_s18 = smov 12  }
  0x35   : > { %3189 = dma.hbm_to_vmem [thread:$0]  (!%p3842_p6), %s3840_s21, 3072, %s3846_s24, %s3850_s25, %s3721_s26, %s3721_s26, %s3722_s18  }
  0x36   : > { %s2780_s20 = sshll.u32 %s3830_s15, 6  ;;  %s2919_s13 = sshll.u32 %s3714_s9, 10 }
  0x37   : > { %s4533_s3 = sld [smem:[#allocation24_spill]]  ;;  %s353_s19 = scalar_lea.vmem [#allocation8], %s2780_s20 }
  0x38   : > { %s360_s1 = sshll.u32 %s353_s19, 4  ;;  %s4534_s11 = sand.u32 1, %s3718_s10   ;;  %s3887_s1 = int_to_ptr.vmem [resolvable:$true] %s360_s1 }
  0x39   : > { %s3891_s17 = scalar_lea.sflag [#allocation9], %s4534_s11 }
  0x3d   : > { %s3885_s23 = scalar_lea.hbm %s4533_s3, %s2919_s13  ;;  %s3483_s24 = scalar_lea.hbm %s4533_s3, 2048 }
  0x3e   : > { %s3478_s29 = scalar_lea.hbm %s3885_s23, 1024  ;;  %p3484_p1 = scmp.lt.u32.totalorder %s3885_s23, %s4533_s3 }
  0x3f   : > { %p3479_p10 = scmp.ne.s32.totalorder %s3885_s23, %s3478_s29  ;;  %p3485_p2 = scmp.lt.u32.totalorder %s3483_s24, %s3478_s29 }
  0x40   : > { %p3487_p4 = scmp.lt.u32.totalorder %s3478_s29, %s3885_s23 }
  0x41   : > { %p3481_p13 = pnand %p3479_p10, %p3856_p8  ;;  %p3486_p3 = por %p3485_p2, %p3484_p1 }
  0x43   : > { %p3482_p0 = pneg %p3481_p13  ;;  %p3488_p5 = por %p3487_p4, %p3486_p3 }
  0x45   : > { %p3489_p7 = pnand %p3488_p5, %p3482_p0 }
  0x47   : > { %3492 = shalt.err (!%p3489_p7)
}
  0x48   : > { %s3493_s11 = scalar_lea.vmem %s3887_s1, 1024  ;;  %s3723_s20 = smov [#allocation8]  }
  0x49   : > { %p3494_p9 = scmp.ne.s32.totalorder %s3887_s1, %s3493_s11  ;;  %s3498_s13 = sshll.u32 %s3723_s20, 4  ;;  %s3499_s13 = int_to_ptr.vmem [resolvable:$false] %s3498_s13 }
  0x4a   : > { %s3500_s16 = scalar_lea.vmem %s3499_s13, 2048  ;;  %p3501_p10 = scmp.lt.s32.totalorder %s3887_s1, %s3499_s13 }
  0x4b   : > { %p3496_p11 = pnand %p3494_p9, %p3856_p8  ;;  %p3502_p13 = scmp.lt.s32.totalorder %s3500_s16, %s3493_s11 }
  0x4d   : > { %p3497_p12 = pneg %p3496_p11  ;;  %p3503_p1 = por %p3502_p13, %p3501_p10 }
  0x4f   : > { %p3504_p2 = pnand %p3503_p1, %p3497_p12 }
  0x51   : > { %3507 = shalt.err (!%p3504_p2)
}
  0x52   : > { %s4510_s29 = smov 64   ;;  %s4511_s19 = smov 4  }
  0x53   : > { %3195 = dma.hbm_to_vmem [thread:$0]  (!%p3842_p6), %s3885_s23, 1024, %s3887_s1, %s3891_s17, %s4510_s29, %s4510_s29, %s4511_s19  }
  0x54   : > { %s3919_s21 = sadd.s32 4294967295, %s3718_s10   ;;  %p87_p0 = scmp.ne.s32.totalorder %s3702_s28, %s3698_s27 }
  0x55   : > { %p4514_p3 = scmp.eq.s32.totalorder %s3919_s21, 0  ;;  %p2775_p4 = scmp.ge.s32.totalorder %s3718_s10, 1 }
  0x56   : > { %p280_p5 = scmp.lt.s32.totalorder %s3718_s10, 3  ;;  %s3726_s1 = smov [#allocation2]  }
  0x57   : > { %p3928_p7 = por %p4514_p3, %p87_p0  ;;  %s295_s23 = sshll.u32 %s3726_s1, 4  ;;  %s3936_s23 = int_to_ptr.vmem [resolvable:$true] %s295_s23 }
  0x58   : > { %p3932_p9 = pnand %p2775_p4, %p280_p5  ;;  %s3160_s27 = smul.u32 3, %s3830_s15 }
  0x59   : > { %s4535_s14 = scalar_select %p3928_p7, 1, 0 }
  0x5a   : > { %s4536_s24 = scalar_select %p3932_p9, 1, 0 }
  0x5b   : > { %p3182_p11 = pneg %p3932_p9  ;;  %s3161_s11 = smul.u32 48, %s3714_s9 }
  0x5c   : > { %s3508_s19 = scalar_lea.hbm %s4498_s0, 256 }
  0x5d   : > { %p3944_p12 = pnand %p3182_p11, %p4514_p3  ;;  %s3952_s16 = scalar_lea.hbm %s4500_s2, %s3161_s11 }
  0x5e   : > { %p3509_p10 = scmp.ne.s32.totalorder %s4498_s0, %s3508_s19  ;;  %p3515_p0 = scmp.lt.u32.totalorder %s3508_s19, %s4498_s0 }
  0x5f   : > { %p3510_p13 = pneg %p3944_p12 }
  0x61   : > { %p3511_p1 = pnand %p3510_p13, %p3509_p10 }
  0x63   : > { %p3512_p2 = pneg %p3511_p1 }
  0x65   : > { %p3517_p4 = pnand %p3515_p0, %p3512_p2 }
  0x67   : > { %3520 = shalt.err (!%p3517_p4)
}
  0x68   : > { %s3521_s11 = scalar_lea.vmem %s3936_s23, 256  ;;  %p3529_p7 = scmp.lt.s32.totalorder %s3936_s23, %s3936_s23 }
  0x69   : > { %p3522_p5 = scmp.ne.s32.totalorder %s3936_s23, %s3521_s11  ;;  %p3530_p9 = scmp.lt.s32.totalorder %s3521_s11, %s3521_s11 }
  0x6b   : > { %p3524_p11 = pnand %p3522_p5, %p3510_p13  ;;  %p3531_p6 = por %p3530_p9, %p3529_p7 }
  0x6d   : > { %p3525_p3 = pneg %p3524_p11 }
  0x6f   : > { %p3532_p8 = pnand %p3531_p6, %p3525_p3 }
  0x71   : > { %3535 = shalt.err (!%p3532_p8)
}
  0x72   : > { %s3727_s3 = smov 128   ;;  %s3728_s8 = smov 8  }
  0x73   : > { %3185 = dma.hbm_to_vmem [thread:$0]  (!%p3944_p12), %s4498_s0, 256, %s3936_s23, [#allocation3], %s3727_s3, %s3727_s3, %s3728_s8  }
  0x74   : > { %s334_s19 = scalar_lea.vmem [#allocation7], %s3160_s27  ;;  %s2920_s20 = sshll.u32 %s3714_s9, 12 }
  0x75   : > { %s342_s26 = sshll.u32 %s334_s19, 4  ;;  %s3981_s11 = scalar_lea.hbm %s4502_s4, %s2920_s20  ;;  %s343_s26 = int_to_ptr.vmem [resolvable:$true] %s342_s26 }
  0x76   : > { %s3536_s7 = scalar_lea.hbm %s3952_s16, 48  ;;  %p4538_p8 = scmp.ne.s32.totalorder %s4532_s12, 0 }
  0x77   : > { %p3537_p6 = scmp.ne.s32.totalorder %s3952_s16, %s3536_s7  ;;  %s3541_s10 = scalar_lea.hbm %s4500_s2, 96 }
  0x78   : > { %p3542_p9 = scmp.lt.u32.totalorder %s3952_s16, %s4500_s2  ;;  %p3543_p12 = scmp.lt.u32.totalorder %s3541_s10, %s3536_s7 }
  0x79   : > { %p3539_p3 = pnand %p3537_p6, %p4538_p8  ;;  %p3545_p13 = scmp.lt.u32.totalorder %s3536_s7, %s3952_s16 }
  0x7a   : > { %p3544_p10 = por %p3543_p12, %p3542_p9 }
  0x7b   : > { %p3540_p7 = pneg %p3539_p3 }
  0x7c   : > { %p3546_p1 = por %p3545_p13, %p3544_p10 }
  0x7e   : > { %p3547_p2 = pnand %p3546_p1, %p3540_p7 }
  0x80   : > { %3550 = shalt.err (!%p3547_p2)
}
  0x81   : > { %s3551_s3 = scalar_lea.vmem %s343_s26, 48  ;;  %s3729_s8 = smov [#allocation7]  }
  0x82   : > { %p3552_p0 = scmp.ne.s32.totalorder %s343_s26, %s3551_s3  ;;  %s3556_s29 = sshll.u32 %s3729_s8, 4  ;;  %s3557_s29 = int_to_ptr.vmem [resolvable:$false] %s3556_s29 }
  0x83   : > { %s3558_s5 = scalar_lea.vmem %s3557_s29, 96  ;;  %p3559_p11 = scmp.lt.s32.totalorder %s343_s26, %s3557_s29 }
  0x84   : > { %p3554_p4 = pnand %p3552_p0, %p4538_p8  ;;  %p3560_p6 = scmp.lt.s32.totalorder %s3558_s5, %s3551_s3 }
  0x86   : > { %p3555_p5 = pneg %p3554_p4  ;;  %p3561_p3 = por %p3560_p6, %p3559_p11 }
  0x88   : > { %p3562_p9 = pnand %p3561_p3, %p3555_p5 }
  0x8a   : > { %3565 = shalt.err (!%p3562_p9)
}
  0x8b   : > { %p4539_p12 = scmp.ne.s32.totalorder %s4531_s22, 0  ;;  %s4540_s7 = sshll.u32 %s3830_s15, 8 }
  0x8c   : > { %s374_s19 = scalar_lea.vmem [#allocation10], %s4540_s7  ;;  %s3566_s1 = scalar_lea.hbm %s3981_s11, 4096 }
  0x8d   : > { %3192 = dma.hbm_to_vmem [thread:$0]  (!%p4539_p12), %s3952_s16, 48, %s343_s26, %s3850_s25  }
  0x8e   : > { %s381_s13 = sshll.u32 %s374_s19, 4  ;;  %p3567_p7 = scmp.ne.s32.totalorder %s3981_s11, %s3566_s1  ;;  %s4003_s13 = int_to_ptr.vmem [resolvable:$true] %s381_s13 }
  0x8f   : > { %s3571_s23 = scalar_lea.hbm %s4502_s4, 8192  ;;  %p3572_p1 = scmp.lt.u32.totalorder %s3981_s11, %s4502_s4 }
  0x90   : > { %p3569_p10 = pnand %p3567_p7, %p4538_p8  ;;  %p3573_p2 = scmp.lt.u32.totalorder %s3571_s23, %s3566_s1 }
  0x91   : > { %p3575_p4 = scmp.lt.u32.totalorder %s3566_s1, %s3981_s11 }
  0x92   : > { %p3570_p13 = pneg %p3569_p10  ;;  %p3574_p0 = por %p3573_p2, %p3572_p1 }
  0x94   : > { %p3576_p5 = por %p3575_p4, %p3574_p0 }
  0x96   : > { %p3577_p11 = pnand %p3576_p5, %p3570_p13 }
  0x98   : > { %3580 = shalt.err (!%p3577_p11)
}
  0x99   : > { %s3581_s25 = scalar_lea.vmem %s4003_s13, 4096  ;;  %s3730_s16 = smov [#allocation10]  }
  0x9a   : > { %p3582_p6 = scmp.ne.s32.totalorder %s4003_s13, %s3581_s25  ;;  %s3586_s26 = sshll.u32 %s3730_s16, 4  ;;  %s3587_s26 = int_to_ptr.vmem [resolvable:$false] %s3586_s26 }
  0x9b   : > { %s3588_s8 = scalar_lea.vmem %s3587_s26, 8192  ;;  %p3589_p7 = scmp.lt.s32.totalorder %s4003_s13, %s3587_s26 }
  0x9c   : > { %p3584_p3 = pnand %p3582_p6, %p4538_p8  ;;  %p3590_p10 = scmp.lt.s32.totalorder %s3588_s8, %s3581_s25 }
  0x9e   : > { %p3585_p9 = pneg %p3584_p3  ;;  %p3591_p1 = por %p3590_p10, %p3589_p7 }
  0xa0   : > { %p3592_p2 = pnand %p3591_p1, %p3585_p9 }
  0xa2   : > { %3595 = shalt.err (!%p3592_p2)
}
  0xa3   : > { %s3731_s29 = smov 256   ;;  %s3732_s5 = smov 16  }
  0xa4   : > { %3198 = dma.hbm_to_vmem [thread:$0]  (!%p4539_p12), %s3981_s11, 4096, %s4003_s13, %s3891_s17, %s3731_s29, %s3731_s29, %s3732_s5  }
  0xa5   : > { %s4032_s1 = scalar_lea.hbm %s4504_s6, %s2920_s20  ;;  %s4541_s18 = sshll.u32 %s3830_s15, 8 }
  0xa6   : > { %s402_s10 = scalar_lea.vmem [#allocation11], %s4541_s18  ;;  %s399_s27 = scalar_lea.sflag [#allocation12], %s3830_s15 }
  0xa7   : > { %s409_s23 = sshll.u32 %s402_s10, 4  ;;  %s3596_s3 = scalar_lea.hbm %s4032_s1, 4096  ;;  %s4036_s23 = int_to_ptr.vmem [resolvable:$true] %s409_s23 }
  0xa8   : > { %p3597_p13 = scmp.ne.s32.totalorder %s4032_s1, %s3596_s3  ;;  %s3601_s20 = scalar_lea.hbm %s4504_s6, 8192 }
  0xa9   : > { %p3602_p5 = scmp.lt.u32.totalorder %s4032_s1, %s4504_s6  ;;  %p3603_p11 = scmp.lt.u32.totalorder %s3601_s20, %s3596_s3 }
  0xaa   : > { %p3599_p0 = pnand %p3597_p13, %p4538_p8  ;;  %p3605_p3 = scmp.lt.u32.totalorder %s3596_s3, %s4032_s1 }
  0xab   : > { %p3604_p6 = por %p3603_p11, %p3602_p5 }
  0xac   : > { %p3600_p4 = pneg %p3599_p0 }
  0xad   : > { %p3606_p9 = por %p3605_p3, %p3604_p6 }
  0xaf   : > { %p3607_p7 = pnand %p3606_p9, %p3600_p4 }
  0xb1   : > { %3610 = shalt.err (!%p3607_p7)
}
  0xb2   : > { %s3611_s16 = scalar_lea.vmem %s4036_s23, 4096  ;;  %s3733_s26 = smov [#allocation11]  }
  0xb3   : > { %p3612_p10 = scmp.ne.s32.totalorder %s4036_s23, %s3611_s16  ;;  %s3616_s8 = sshll.u32 %s3733_s26, 4  ;;  %s3617_s8 = int_to_ptr.vmem [resolvable:$false] %s3616_s8 }
  0xb4   : > { %s3618_s29 = scalar_lea.vmem %s3617_s8, 8192  ;;  %p3619_p13 = scmp.lt.s32.totalorder %s4036_s23, %s3617_s8 }
  0xb5   : > { %p3614_p1 = pnand %p3612_p10, %p4538_p8  ;;  %p3620_p0 = scmp.lt.s32.totalorder %s3618_s29, %s3611_s16 }
  0xb7   : > { %p3615_p2 = pneg %p3614_p1  ;;  %p3621_p5 = por %p3620_p0, %p3619_p13 }
  0xb9   : > { %p3622_p11 = pnand %p3621_p5, %p3615_p2 }
  0xbb   : > { %3625 = shalt.err (!%p3622_p11)
}
  0xbc   : > { %s4542_s5 = smov 4   ;;  %s4543_s7 = smov 64  }
  0xbd   : > { %3201 = dma.hbm_to_vmem [thread:$0]  (!%p4539_p12), %s4032_s1, 4096, %s4036_s23, %s399_s27, %s4543_s7, %s4543_s7, %s4542_s5  }
  0xbe   : > { %p4544_p8 = scmp.ne.s32.totalorder %s4536_s24, 0 }
  0xbf   : > { %p4545_p4 = scmp.eq.s32.totalorder (!%p4544_p8), %s3919_s21, 0 }
  0xc0   : > { %428 = sbr.rel (%p4544_p8) target bundleno = 4319 (0x10df), region = 52 }
  0xc7   : > { %3677 = dma.done.wait (%p4545_p4), [#allocation3], 256   ;;  %p4546_p6 = pmov %p4545_p4 }
  0xc8   : > { %s434_s22 = sand.u32 1, %s3919_s21   ;;  %s436_s12 = sand.u32 1, %s3702_s28  }
  0xc9   : > { %3679 = vsyncadd (%p4546_p6), [#allocation3], 4294967040  ;;  %s3162_s19 = smul.u32 192, %s436_s12  ;;  %s435_s18 = scalar_lea.sflag [#allocation6], %s434_s22 }
  0xca   : > { %p4547_p3 = scmp.ne.s32.totalorder %s4535_s14, 0 }
  0xcb   : > { %s4073_s15 = scalar_lea.vmem [#allocation5], %s3162_s19 }
  0xcc   : > { %3681 = dma.done.wait (%p4547_p3), %s435_s18, 3120  }
  0xcd   : > { %3683 = vsyncadd (%p4547_p3), %s435_s18, 4294964176  ;;  %s3163_s24 = smul.u32 3, %s436_s12  ;;  %s2791_s1 = sshll.u32 %s436_s12, 6 }
  0xce   : > { %s453_s23 = scalar_lea.sflag [#allocation9], %s434_s22  ;;  %s4081_s27 = scalar_lea.vmem [#allocation8], %s2791_s1 }
  0xcf   : > { %s4079_s10 = scalar_lea.vmem [#allocation7], %s3163_s24 }
  0xd0   : > { %3685 = dma.done.wait (%p4547_p3), %s453_s23, 5120  }
  0xd1   : > { %3687 = vsyncadd (%p4547_p3), %s453_s23, 4294962176  ;;  %s2792_s3 = sshll.u32 %s436_s12, 8  ;;  %s471_s11 = scalar_lea.sflag [#allocation12], %s436_s12 }
  0xd2   : > { %s4087_s17 = scalar_lea.vmem [#allocation10], %s2792_s3  ;;  %s4089_s20 = scalar_lea.vmem [#allocation11], %s2792_s3 }
  0xd3   : > { %3689 = dma.done.wait (%p4547_p3), %s471_s11, 4096  }
  0xd4   : > { %3691 = vsyncadd (%p4547_p3), %s471_s11, 4294963200  ;;  %p531_p12 = scmp.lt.s32.totalorder %s3710_s30, 1  ;;  %s4548_s29 = sld [smem:[#allocation25_spill]] }
  0xd5   : > { %s4549_s12 = sld [smem:[#allocation26_spill]]  ;;  %p2796_p9 = scmp.ne.s32.totalorder %s3710_s30, 0 }
  0xd6   : > { %s532_s13 = scalar_select %p531_p12, %s3710_s30, 1 }
  0xd7   : > { %544 = sbr.rel (%p2796_p9) target bundleno = 222 (0xde), region = 80  ;;  %v545_v0 = vld [vmem:[#allocation2] sm:$0xff] (!%p2796_p9)  ;;  %v546_v1 = vld [vmem:[#allocation2 + $0x8] sm:$0xff] (!%p2796_p9) }
  0xd8   : > { %s2794_s25 = sshll.u32 %s532_s13, 2  ;;  %s2795_s16 = sshll.u32 %s532_s13, 3  ;;  %547 = vst [vmem:[#allocation13] sm:$0xff] (!%p2796_p9), %v545_v0  ;;  %548 = vst [vmem:[#allocation13 + $0x8] sm:$0xff] (!%p2796_p9), %v546_v1 }
  0xda   : > { %s4100_s5 = scalar_lea.vmem %s4548_s29, %s2794_s25 }
  0xdb   : > { %s4105_s19 = scalar_lea.vmem %s4549_s12, %s2795_s16 }
  0xde PF: > { %v3288_v2 = vld [vmem:[%s4073_s15 + $0x4] ss:$12 sps:$4 sm:$0xff]   ;;  %v3290_v3 = vld [vmem:[%s4073_s15] ss:$12 sps:$4 sm:$0xff]   ;;  %v3734_v4 = vmov 0   ;;  %v3735_v5 = vmov 0.0   ;;  %v586_v31 = vlaneseq }
  0xdf   : > { %761 = vmatprep.mubr.bf16.mxu0 %v3734_v4  ;;  %3022 = vmatprep.subr.bf16.mxu1 %v3735_v5  ;;  %v3291_v6 = vld [vmem:[%s4073_s15 + $0x1c] ss:$12 sps:$4 sm:$0xff]   ;;  %v3293_v7 = vld [vmem:[%s4073_s15 + $0x18] ss:$12 sps:$4 sm:$0xff]   ;;  %v3294_v8 = vld [vmem:[%s4073_s15 + $0x34] ss:$12 sps:$4 sm:$0xff]  }
  0xe0   : > { %729 = vmatprep.subr.bf16.mxu0 %v3288_v2  ;;  %v3296_v9 = vld [vmem:[%s4073_s15 + $0x30] ss:$12 sps:$4 sm:$0xff]   ;;  %v3297_v10 = vld [vmem:[%s4073_s15 + $0x4c] ss:$12 sps:$4 sm:$0xff]   ;;  %v3299_v11 = vld [vmem:[%s4073_s15 + $0x48] ss:$12 sps:$4 sm:$0xff]  }
  0xe1   : > { %730 = vmatpush1.bf16.msra.mxu0 %v3290_v3  ;;  %v3300_v12 = vld [vmem:[%s4073_s15 + $0x64] ss:$12 sps:$4 sm:$0xff]   ;;  %v3312_v13 = vld [vmem:[%s4073_s15 + $0x8] ss:$12 sps:$4 sm:$0xff]   ;;  %v3313_v14 = vld [vmem:[%s4073_s15 + $0x20] ss:$12 sps:$4 sm:$0xff]  }
  0xe2   : > { %731 = vmatprep.subr.bf16.mxu0 %v3291_v6  ;;  %3023 = vmatpush3.bf16.msra.mxu1 %v3312_v13  ;;  %v3302_v15 = vld [vmem:[%s4073_s15 + $0x60] ss:$12 sps:$4 sm:$0xff]   ;;  %v3303_v16 = vld [vmem:[%s4073_s15 + $0x7c] ss:$12 sps:$4 sm:$0xff]   ;;  %v3314_v17 = vld [vmem:[%s4073_s15 + $0x38] ss:$12 sps:$4 sm:$0xff]  }
  0xe3   : > { %3024 = vmatprep.subr.bf16.mxu1 %v3735_v5  ;;  %v3305_v18 = vld [vmem:[%s4073_s15 + $0x78] ss:$12 sps:$4 sm:$0xff]   ;;  %v3306_v19 = vld [vmem:[%s4073_s15 + $0x94] ss:$12 sps:$4 sm:$0xff]   ;;  %v3315_v20 = vld [vmem:[%s4073_s15 + $0x50] ss:$12 sps:$4 sm:$0xff]  }
  0xe4   : > { %v3308_v21 = vld [vmem:[%s4073_s15 + $0x90] ss:$12 sps:$4 sm:$0xff]   ;;  %v3309_v22 = vld [vmem:[%s4073_s15 + $0xac] ss:$12 sps:$4 sm:$0xff]   ;;  %v3316_v23 = vld [vmem:[%s4073_s15 + $0x68] ss:$12 sps:$4 sm:$0xff]  }
  0xe5   : > { %732 = vmatpush1.bf16.msra.mxu0 %v3293_v7  ;;  %v3311_v24 = vld [vmem:[%s4073_s15 + $0xa8] ss:$12 sps:$4 sm:$0xff]   ;;  %v3317_v27 = vld [vmem:[%s4073_s15 + $0x80] ss:$12 sps:$4 sm:$0xff]   ;;  %v3318_v29 = vld [vmem:[%s4073_s15 + $0x98] ss:$12 sps:$4 sm:$0xff]  }
  0xe6   : > { %733 = vmatprep.subr.bf16.mxu0 %v3294_v8  ;;  %3025 = vmatpush3.bf16.msra.mxu1 %v3313_v14  ;;  %v4134_v25 = vld [vmem:[#allocation13] sm:$0xff]  ;;  %v4136_v26 = vld [vmem:[#allocation13 + $0x8] sm:$0xff]  ;;  %vm3736_vm0 = vmmov 0   ;;  %v4155_v32 = vshrl.u32 %v586_v31, 7  ;;  %v584_v34 = vld [vmem:[%s4079_s10] sm:$0x7] }
  0xe7   : > { %3026 = vmatprep.subr.bf16.mxu1 %v3735_v5  ;;  %v551_v28 = vpack.c.bf16 %v4136_v26, %v4134_v25  ;;  %v3319_v30 = vld [vmem:[%s4073_s15 + $0xb0] ss:$12 sps:$4 sm:$0xff]   ;;  %3038 = vmatprep.mubr.msk.bf16.mxu1 %vm3736_vm0, %v3735_v5  ;;  %vm833_vm1 = vcmask 261120   ;;  %vm954_vm2 = vcmask 1043456   ;;  %vm926_vm3 = vcmask 64512   ;;  %s3737_s30 = smov 96  }
  0xe8   : > { %v4158_v33 = vsub.s32 1, %v4155_v32  ;;  %v4162_v35 = vsub.s32 0, %v4155_v32  ;;  %v4189_v54 = vsub.s32 2, %v4155_v32  ;;  %s3738_s14 = smov 64   ;;  %s3739_s18 = smov 32   ;;  %vm1730_vm4 = vcmask 523264  }
  0xe9   : > { %734 = vmatpush1.bf16.msra.mxu0 %v3296_v9  ;;  %vm1733_vm5 = vcmask 785408   ;;  %s3740_s15 = smov [#allocation13]   ;;  %p3205_p7 = scmp.eq.s32.totalorder %s3919_s21, 1 }
  0xea   : > { %735 = vmatprep.subr.bf16.mxu0 %v3297_v10  ;;  %3027 = vmatpush3.bf16.msra.mxu1 %v3314_v17  ;;  %v593_v36 = vrot.slane %v584_v34, %v4158_v33  ;;  %v589_v37 = vrot.slane %v584_v34, %v4162_v35  ;;  %v597_v55 = vrot.slane %v584_v34, %v4189_v54  ;;  %s2586_s24 = sshll.u32 %s3740_s15, 4  ;;  %s2587_s24 = int_to_ptr.vmem [resolvable:$true] %s2586_s24 }
  0xeb   : > { %3028 = vmatprep.subr.bf16.mxu1 %v3735_v5  ;;  %s3626_s1 = scalar_lea.vmem %s2587_s24, 256  ;;  %p3633_p13 = scmp.lt.s32.totalorder %s2587_s24, %s2587_s24 }
  0xec   : > { %p3627_p10 = scmp.ne.s32.totalorder %s2587_s24, %s3626_s1  ;;  %p3634_p0 = scmp.lt.s32.totalorder %s3626_s1, %s3626_s1 }
  0xed   : > { %736 = vmatpush1.bf16.msra.mxu0 %v3299_v11 }
  0xee   : > { %737 = vmatprep.subr.bf16.mxu0 %v3300_v12  ;;  %3029 = vmatpush3.bf16.msra.mxu1 %v3315_v20  ;;  %p3628_p1 = pnand %p3627_p10, %p3205_p7  ;;  %p3635_p5 = por %p3634_p0, %p3633_p13 }
  0xef   : > { %3030 = vmatprep.subr.bf16.mxu1 %v3735_v5 }
  0xf0   : > { %p3629_p2 = pneg %p3628_p1 }
  0xf1   : > { %738 = vmatpush1.bf16.msra.mxu0 %v3302_v15 }
  0xf2   : > { %739 = vmatprep.subr.bf16.mxu0 %v3303_v16  ;;  %3031 = vmatpush3.bf16.msra.mxu1 %v3316_v23  ;;  %p3636_p11 = pnand %p3635_p5, %p3629_p2 }
  0xf3   : > { %3032 = vmatprep.subr.bf16.mxu1 %v3735_v5 }
  0xf5   : > { %740 = vmatpush1.bf16.msra.mxu0 %v3305_v18 }
  0xf6   : > { %741 = vmatprep.subr.bf16.mxu0 %v3306_v19  ;;  %3033 = vmatpush3.bf16.msra.mxu1 %v3317_v27 }
  0xf7   : > { %3034 = vmatprep.subr.bf16.mxu1 %v3735_v5 }
  0xf9   : > { %742 = vmatpush1.bf16.msra.mxu0 %v3308_v21 }
  0xfa   : > { %743 = vmatprep.subr.bf16.mxu0 %v3309_v22  ;;  %3035 = vmatpush3.bf16.msra.mxu1 %v3318_v29 }
  0xfb   : > { %3036 = vmatprep.subr.bf16.mxu1 %v3735_v5 }
  0xfd   : > { %744 = vmatpush1.bf16.msra.mxu0 %v3311_v24 }
  0xfe   : > { %3066 = vmatprep.subr.bf16.mxu0 %v3735_v5  ;;  %3037 = vmatpush3.bf16.msra.mxu1 %v3319_v30 }
  0xff   : > { %3042 = vmatprep.subr.bf16.mxu1 %v3735_v5 }
 0x100   : > { %762 = vmatmul.mubr.bf16.vlgmr.msra.gmra.mrb[0].mxu0 %v551_v28 }
 0x101   : > { %3068 = vmatprep.mubr.msk.bf16.mxu0 %vm3736_vm0, %v3735_v5  ;;  %3039 = vmatmul.mubr.bf16.vlgmr.msra.gmra.mrb[0].mxu1 %v551_v28 }
 0x102   : > { %3044 = vmatprep.mubr.msk.bf16.mxu1 %vm3736_vm0, %v3735_v5 }
 0x1d3   : > { %v763_v38 = vpop.f32.mrb[0].mxu0 }
 0x1d4   : > { %v765_v39 = vpop.f32.mrb[1].mxu0  ;;  %v764_v43 = vadd.f32 %v763_v38, %v589_v37  ;;  %v806_v56 = vpop.f32.mrb[0].mxu1 }
 0x1d5   : > { %v766_v40 = vadd.f32 %v765_v39, %v593_v36  ;;  %v767_v41 = vpop.f32.mrb[2].mxu0  ;;  %v807_v57 = vadd.f32 %v806_v56, %v597_v55  ;;  %v3040_v58 = vpop.f32.mrb[1].mxu1 }
 0x1d6   : > { %v769_v42 = vpop.f32.mrb[3].mxu0  ;;  %v813_v47 = vmul.f32 0.17677669, %v764_v43  ;;  %v768_v50 = vadd.f32 %v767_v41, %v589_v37  ;;  %v809_v59 = vpop.f32.mrb[2].mxu1 }
 0x1d7   : > { %v4166_v44 = vpack.c.bf16 %v766_v40, %v766_v40  ;;  %v770_v45 = vadd.f32 %v769_v42, %v593_v36  ;;  %v4192_v60 = vpack.c.bf16 %v807_v57, %v807_v57  ;;  %v810_v61 = vadd.f32 %v809_v59, %v597_v55  ;;  %v3041_v62 = vpop.f32.mrb[3].mxu1 }
 0x1d8   : > { %v4173_v49 = vpack.c.bf16 %v813_v47, %v813_v47  ;;  %v814_v52 = vmul.f32 0.17677669, %v768_v50 }
 0x1d9   : > { %v838_v46 = vsel %vm833_vm1, %v4166_v44, 0  ;;  %v4171_v48 = vpack.c.bf16 %v770_v45, %v770_v45  ;;  %v956_v63 = vsel %vm954_vm2, %v4192_v60, 0  ;;  %v4211_v28 = vpack.c.bf16 %v810_v61, %v810_v61 }
 0x1da   : > { %3043 = vmatpush3.bf16.xpose.msra.mxu1 %v838_v46  ;;  %v4182_v53 = vpack.c.bf16 %v814_v52, %v814_v52 }
 0x1db   : > { %3048 = vmatprep.subr.bf16.mxu1 %v3735_v5  ;;  %v884_v51 = vsel %vm833_vm1, %v4171_v48, 0  ;;  %v1002_v31 = vsel %vm954_vm2, %v4211_v28, 0 }
 0x1e1   : > { %3045 = vmatmul.mubr.msk.bf16.vlgmr.msra.gmra.mrb[4].mxu1 %vm833_vm1, %v4173_v49 }
 0x1e2   : > { %3049 = vmatpush3.bf16.xpose.msra.mxu1 %v884_v51  ;;  %3050 = vmatprep.mubr.msk.bf16.mxu1 %vm3736_vm0, %v3735_v5 }
 0x1e3   : > { %3054 = vmatprep.subr.bf16.mxu1 %v3735_v5 }
 0x1e9   : > { %3051 = vmatmul.mubr.msk.bf16.vlgmr.msra.gmra.mrb[8].mxu1 %vm833_vm1, %v4182_v53 }
 0x1ea   : > { %3056 = vmatprep.mubr.msk.bf16.mxu1 %vm3736_vm0, %v3735_v5  ;;  %3055 = vmatpush3.bf16.msra.mxu1 %v956_v63 }
 0x1eb   : > { %3060 = vmatprep.subr.bf16.mxu1 %v3735_v5 }
 0x2b4   : > { %v874_v0 = vpop.f32.mrb[4].mxu1 }
 0x2b5   : > { %v3046_v1 = vpop.f32.mrb[5].mxu1  ;;  %v927_v2 = vsel %vm926_vm3, %v874_v0, -inf }
 0x2b6   : > { %928 = vmax.xlane.f32.xlu0 %v927_v2  ;;  %v877_v3 = vpop.f32.mrb[6].mxu1 }
 0x2b7   : > { %v3047_v6 = vpop.f32.mrb[7].mxu1 }
 0x2bc   : > { %v920_v7 = vpop.f32.mrb[8].mxu1 }
 0x2bd   : > { %v3052_v8 = vpop.f32.mrb[9].mxu1  ;;  %v930_v9 = vsel %vm926_vm3, %v920_v7, -inf }
 0x2be   : > { %931 = vmax.xlane.f32.xlu0 %v930_v9  ;;  %v923_v10 = vpop.f32.mrb[10].mxu1 }
 0x2bf   : > { %v3053_v11 = vpop.f32.mrb[11].mxu1 }
 0x2d4   : > { %1046 = vrot.lane.b32.xlu0 %v4166_v44, %s3737_s30 }
 0x343   : > { %v929_v12 = vpop.xlane.xlu0 %928 }
 0x344   : > { %v933_v13 = vsub.f32 %v874_v0, %v929_v12 }
 0x346   : > { %v935_v14 = vmul.f32 1.442695, %v933_v13 }
 0x348   : > { %3408 = vpow2.f32 %v935_v14 }
 0x34b   : > { %v932_v15 = vpop.xlane.xlu0 %931 }
 0x34c   : > { %v934_v20 = vsub.f32 %v920_v7, %v932_v15 }
 0x34e   : > { %v937_v21 = vmul.f32 1.442695, %v934_v20 }
 0x34f   : > { %v1047_v16 = vpop.permute.xlu0 %1046 }
 0x350   : > { %v1052_v17 = vsel %vm833_vm1, %v1047_v16, 0  ;;  %3410 = vpow2.f32 %v937_v21 }
 0x351   : > { %3067 = vmatpush3.bf16.xpose.msra.mxu0 %v1052_v17 }
 0x352   : > { %v3409_v18 = vpop.eup %3408  ;;  %3078 = vmatprep.subr.bf16.mxu0 %v3735_v5 }
 0x353   : > { %v939_v19 = vsel %vm926_vm3, %v3409_v18, 0.0 }
 0x354   : > { %940 = vadd.xlane.f32.xlu1 %v939_v19 }
 0x35a   : > { %v3411_v22 = vpop.eup %3410 }
 0x35b   : > { %v942_v23 = vsel %vm926_vm3, %v3411_v22, 0.0 }
 0x365   : > { %1096 = vrot.lane.b32.xlu1 %v4171_v48, %s3737_s30 }
 0x389   : > { %943 = vadd.xlane.f32.xlu1 %v942_v23 }
 0x39a   : > { %1044 = vrot.lane.b32.xlu1 %v4173_v49, %s3737_s30 }
 0x39e   : > { %1094 = vrot.lane.b32.xlu1 %v4182_v53, %s3737_s30 }
 0x3e1   : > { %v941_v24 = vpop.xlane.xlu1 %940 }
 0x3e2   : > { %3412 = vrcp.f32 %v941_v24 }
 0x3e5   : > { %v1097_v34 = vpop.permute.xlu1 %1096 }
 0x3e6   : > { %v1102_v41 = vsel %vm833_vm1, %v1097_v34, 0 }
 0x3ec   : > { %v3413_v27 = vpop.eup %3412 }
 0x3ed   : > { %v947_v29 = vmul.f32 %v3413_v27, %v3409_v18 }
 0x3ef   : > { %v949_v30 = vpack.c.bf16 %v947_v29, %v947_v29 }
 0x3f1   : > { %3057 = vmatmul.mubr.msk.bf16.vlgmr.msra.gmra.mrb[12].mxu1 %vm926_vm3, %v949_v30 }
 0x3f2   : > { %3061 = vmatpush3.bf16.msra.mxu1 %v1002_v31  ;;  %3062 = vmatprep.mubr.msk.bf16.mxu1 %vm3736_vm0, %v3735_v5 }
 0x3f3   : > { %3072 = vmatprep.subr.bf16.mxu1 %v3735_v5 }
 0x416   : > { %v944_v36 = vpop.xlane.xlu1 %943 }
 0x417   : > { %3414 = vrcp.f32 %v944_v36 }
 0x41a   : > { %v1045_v37 = vpop.permute.xlu1 %1044 }
 0x41b   : > { %3069 = vmatmul.mubr.msk.bf16.vlgmr.msra.gmra.mrb[4].mxu0 %vm833_vm1, %v1045_v37 }
 0x41c   : > { %3080 = vmatprep.mubr.msk.bf16.mxu0 %vm3736_vm0, %v3735_v5 }
 0x41e   : > { %v1095_v42 = vpop.permute.xlu1 %1094 }
 0x421   : > { %v3415_v38 = vpop.eup %3414 }
 0x422   : > { %v948_v39 = vmul.f32 %v3415_v38, %v3411_v22 }
 0x424   : > { %v950_v40 = vpack.c.bf16 %v948_v39, %v948_v39 }
 0x426   : > { %3063 = vmatmul.mubr.msk.bf16.vlgmr.msra.gmra.mrb[16].mxu1 %vm926_vm3, %v950_v40 }
 0x427   : > { %3073 = vmatpush3.bf16.xpose.msra.mxu1 %v1102_v41  ;;  %3074 = vmatprep.mubr.msk.bf16.mxu1 %vm3736_vm0, %v3735_v5 }
 0x428   : > { %3084 = vmatprep.subr.bf16.mxu1 %v3735_v5 }
 0x42e   : > { %3075 = vmatmul.mubr.msk.bf16.vlgmr.msra.gmra.mrb[20].mxu1 %vm833_vm1, %v1095_v42 }
 0x42f   : > { %3086 = vmatprep.mubr.msk.bf16.mxu1 %vm3736_vm0, %v3735_v5 }
 0x4c4   : > { %v4230_v43 = vpop.f32.mrb[12].mxu1 }
 0x4c5   : > { %v3058_v45 = vpop.f32.mrb[13].mxu1 }
 0x4c6   : > { %v995_v46 = vpop.f32.mrb[14].mxu1 }
 0x4c7   : > { %v3059_v47 = vpop.f32.mrb[15].mxu1 }
 0x4ee   : > { %v1088_v50 = vpop.f32.mrb[4].mxu0 }
 0x4ef   : > { %v3070_v51 = vpop.f32.mrb[5].mxu0  ;;  %v1144_v52 = vsel %vm926_vm3, %v1088_v50, -inf }
 0x4f0   : > { %1145 = vmax.xlane.f32.xlu0 %v1144_v52  ;;  %v1091_v55 = vpop.f32.mrb[6].mxu0 }
 0x4f1   : > { %v3071_v56 = vpop.f32.mrb[7].mxu0 }
 0x4f9   : > { %v4233_v57 = vpop.f32.mrb[16].mxu1 }
 0x4fa   : > { %v3064_v58 = vpop.f32.mrb[17].mxu1 }
 0x4fb   : > { %v1041_v59 = vpop.f32.mrb[18].mxu1 }
 0x4fc   : > { %v3065_v61 = vpop.f32.mrb[19].mxu1 }
 0x501   : > { %v1138_v62 = vpop.f32.mrb[20].mxu1 }
 0x502   : > { %v3076_v63 = vpop.f32.mrb[21].mxu1  ;;  %v1147_v0 = vsel %vm926_vm3, %v1138_v62, -inf }
 0x503   : > { %1148 = vmax.xlane.f32.xlu1 %v1147_v0  ;;  %v1141_v1 = vpop.f32.mrb[22].mxu1 }
 0x504   : > { %v3077_v2 = vpop.f32.mrb[23].mxu1 }
 0x514   : > { %1216 = vrot.lane.b32.xlu1 %v4211_v28, %s3737_s30 }
 0x518   : > { %1266 = vrot.lane.b32.xlu1 %v4166_v44, %s3738_s14 }
 0x51c   : > { %1316 = vrot.lane.b32.xlu1 %v4171_v48, %s3738_s14 }
 0x520   : > { %1314 = vrot.lane.b32.xlu1 %v4182_v53, %s3738_s14 }
 0x57d   : > { %v1146_v3 = vpop.xlane.xlu0 %1145 }
 0x57e   : > { %v1150_v6 = vsub.f32 %v1088_v50, %v1146_v3 }
 0x580   : > { %v1152_v7 = vmul.f32 1.442695, %v1150_v6 }
 0x582   : > { %3416 = vpow2.f32 %v1152_v7 }
 0x58c   : > { %v3417_v8 = vpop.eup %3416 }
 0x58d   : > { %v1156_v9 = vsel %vm926_vm3, %v3417_v8, 0.0 }
 0x58e   : > { %1157 = vadd.xlane.f32.xlu0 %v1156_v9 }
 0x590   : > { %v1149_v10 = vpop.xlane.xlu1 %1148 }
 0x591   : > { %v1151_v11 = vsub.f32 %v1138_v62, %v1149_v10 }
 0x593   : > { %v1154_v12 = vmul.f32 1.442695, %v1151_v11 }
 0x594   : > { %v1217_v13 = vpop.permute.xlu1 %1216 }
 0x595   : > { %3418 = vpow2.f32 %v1154_v12  ;;  %v1222_v14 = vsel %vm954_vm2, %v1217_v13, 0 }
 0x596   : > { %3085 = vmatpush3.bf16.msra.mxu1 %v1222_v14 }
 0x597   : > { %3096 = vmatprep.subr.bf16.mxu1 %v3735_v5 }
 0x598   : > { %v1267_v23 = vpop.permute.xlu1 %1266 }
 0x599   : > { %v1272_v31 = vsel %vm833_vm1, %v1267_v23, 0 }
 0x59c   : > { %v1317_v30 = vpop.permute.xlu1 %1316 }
 0x59d   : > { %v1322_v36 = vsel %vm833_vm1, %v1317_v30, 0 }
 0x59f   : > { %v3419_v15 = vpop.eup %3418 }
 0x5a0   : > { %v1159_v16 = vsel %vm926_vm3, %v3419_v15, 0.0  ;;  %v1315_v38 = vpop.permute.xlu1 %1314 }
 0x5a1   : > { %1160 = vadd.xlane.f32.xlu0 %v1159_v16 }
 0x5b7   : > { %1168 = vrot.lane.b32.xlu0 %v4192_v60, %s3737_s30 }
 0x5bb   : > { %1264 = vrot.lane.b32.xlu0 %v4173_v49, %s3738_s14 }
 0x61b   : > { %v1158_v17 = vpop.xlane.xlu0 %1157 }
 0x61c   : > { %3420 = vrcp.f32 %v1158_v17 }
 0x626   : > { %v3421_v18 = vpop.eup %3420 }
 0x627   : > { %v1164_v20 = vmul.f32 %v3421_v18, %v3417_v8 }
 0x629   : > { %v1166_v24 = vpack.c.bf16 %v1164_v20, %v1164_v20 }
 0x62e   : > { %v1161_v19 = vpop.xlane.xlu0 %1160 }
 0x62f   : > { %3422 = vrcp.f32 %v1161_v19 }
 0x632   : > { %v1169_v21 = vpop.permute.xlu0 %1168 }
 0x633   : > { %v1174_v22 = vsel %vm954_vm2, %v1169_v21, 0 }
 0x634   : > { %3079 = vmatpush3.bf16.msra.mxu0 %v1174_v22 }
 0x635   : > { %3090 = vmatprep.subr.bf16.mxu0 %v3735_v5 }
 0x636   : > { %v1265_v37 = vpop.permute.xlu0 %1264 }
 0x637   : > { %3081 = vmatmul.mubr.msk.bf16.vlgmr.msra.gmra.mrb[8].mxu0 %vm926_vm3, %v1166_v24 }
 0x638   : > { %3092 = vmatprep.mubr.msk.bf16.mxu0 %vm3736_vm0, %v3735_v5 }
 0x639   : > { %v3423_v27 = vpop.eup %3422 }
 0x63a   : > { %v1165_v29 = vmul.f32 %v3423_v27, %v3419_v15 }
 0x63c   : > { %v1167_v34 = vpack.c.bf16 %v1165_v29, %v1165_v29 }
 0x63d   : > { %3091 = vmatpush3.bf16.xpose.msra.mxu0 %v1272_v31 }
 0x63e   : > { %3087 = vmatmul.mubr.msk.bf16.vlgmr.msra.gmra.mrb[24].mxu1 %vm926_vm3, %v1167_v34  ;;  %3102 = vmatprep.subr.bf16.mxu0 %v3735_v5 }
 0x63f   : > { %3097 = vmatpush3.bf16.xpose.msra.mxu1 %v1322_v36  ;;  %3098 = vmatprep.mubr.msk.bf16.mxu1 %vm3736_vm0, %v3735_v5 }
 0x640   : > { %3108 = vmatprep.subr.bf16.mxu1 %v3735_v5 }
 0x644   : > { %3093 = vmatmul.mubr.msk.bf16.vlgmr.msra.gmra.mrb[12].mxu0 %vm833_vm1, %v1265_v37 }
 0x645   : > { %3104 = vmatprep.mubr.msk.bf16.mxu0 %vm3736_vm0, %v3735_v5 }
 0x646   : > { %3099 = vmatmul.mubr.msk.bf16.vlgmr.msra.gmra.mrb[28].mxu1 %vm833_vm1, %v1315_v38 }
 0x647   : > { %3110 = vmatprep.mubr.msk.bf16.mxu1 %vm3736_vm0, %v3735_v5 }
 0x70a   : > { %v4270_v39 = vpop.f32.mrb[8].mxu0 }
 0x70b   : > { %v3082_v40 = vpop.f32.mrb[9].mxu0 }
 0x70c   : > { %v1213_v41 = vpop.f32.mrb[10].mxu0 }
 0x70d   : > { %v3083_v42 = vpop.f32.mrb[11].mxu0 }
 0x711   : > { %v4272_v45 = vpop.f32.mrb[24].mxu1 }
 0x712   : > { %v3273_v46 = vpack.i.bf16 %v4272_v45, %v4270_v39  ;;  %v3088_v47 = vpop.f32.mrb[25].mxu1 }
 0x713   : > { %v1261_v50 = vpop.f32.mrb[26].mxu1 }
 0x714   : > { %v3089_v51 = vpop.f32.mrb[27].mxu1 }
 0x717   : > { %v1308_v52 = vpop.f32.mrb[12].mxu0 }
 0x718   : > { %v3094_v55 = vpop.f32.mrb[13].mxu0  ;;  %v1364_v56 = vsel %vm926_vm3, %v1308_v52, -inf }
 0x719   : > { %1365 = vmax.xlane.f32.xlu0 %v1364_v56  ;;  %v1311_v58 = vpop.f32.mrb[14].mxu0  ;;  %v1358_v59 = vpop.f32.mrb[28].mxu1 }
 0x71a   : > { %v3095_v61 = vpop.f32.mrb[15].mxu0  ;;  %v3100_v62 = vpop.f32.mrb[29].mxu1  ;;  %v1367_v63 = vsel %vm926_vm3, %v1358_v59, -inf }
 0x71b   : > { %1368 = vmax.xlane.f32.xlu1 %v1367_v63  ;;  %v1361_v0 = vpop.f32.mrb[30].mxu1 }
 0x71c   : > { %v3101_v1 = vpop.f32.mrb[31].mxu1 }
 0x72c   : > { %1436 = vrot.lane.b32.xlu1 %v4211_v28, %s3738_s14 }
 0x730   : > { %1486 = vrot.lane.b32.xlu1 %v4166_v44, %s3739_s18 }
 0x734   : > { %1536 = vrot.lane.b32.xlu1 %v4171_v48, %s3739_s18 }
 0x738   : > { %1534 = vrot.lane.b32.xlu1 %v4182_v53, %s3739_s18 }
 0x7a6   : > { %v1366_v2 = vpop.xlane.xlu0 %1365 }
 0x7a7   : > { %v1370_v3 = vsub.f32 %v1308_v52, %v1366_v2 }
 0x7a8   : > { %v1369_v6 = vpop.xlane.xlu1 %1368 }
 0x7a9   : > { %v1372_v7 = vmul.f32 1.442695, %v1370_v3  ;;  %v1371_v8 = vsub.f32 %v1358_v59, %v1369_v6 }
 0x7ab   : > { %3424 = vpow2.f32 %v1372_v7  ;;  %v1374_v9 = vmul.f32 1.442695, %v1371_v8 }
 0x7ac   : > { %v1437_v10 = vpop.permute.xlu1 %1436 }
 0x7ad   : > { %3426 = vpow2.f32 %v1374_v9  ;;  %v1442_v11 = vsel %vm954_vm2, %v1437_v10, 0 }
 0x7ae   : > { %3109 = vmatpush3.bf16.msra.mxu1 %v1442_v11 }
 0x7af   : > { %3120 = vmatprep.subr.bf16.mxu1 %v3735_v5 }
 0x7b0   : > { %v1487_v18 = vpop.permute.xlu1 %1486 }
 0x7b4   : > { %v1537_v23 = vpop.permute.xlu1 %1536 }
 0x7b5   : > { %v3425_v44 = vpop.eup %3424  ;;  %v1542_v27 = vsel %vm833_vm1, %v1537_v23, 0  ;;  %v3327_v23 = vld [vmem:[%s4081_s27 + $0x38] sm:$0xff]  }
 0x7b6   : > { %v1376_v48 = vsel %vm926_vm3, %v3425_v44, 0.0 }
 0x7b7   : > { %v3427_v12 = vpop.eup %3426  ;;  %1377 = vadd.xlane.f32.xlu0 %v1376_v48 }
 0x7b8   : > { %v1379_v53 = vsel %vm926_vm3, %v3427_v12, 0.0  ;;  %v1535_v30 = vpop.permute.xlu1 %1534 }
 0x7bb   : > { %1380 = vadd.xlane.f32.xlu0 %v1379_v53 }
 0x7d1   : > { %1388 = vrot.lane.b32.xlu0 %v4192_v60, %s3738_s14 }
 0x7d5   : > { %1484 = vrot.lane.b32.xlu0 %v4173_v49, %s3739_s18  ;;  %v1492_v49 = vsel %vm833_vm1, %v1487_v18, 0  ;;  %v3322_v18 = vld [vmem:[%s4081_s27 + $0x10] sm:$0xff]  }
 0x844   : > { %v1378_v13 = vpop.xlane.xlu0 %1377 }
 0x845   : > { %3428 = vrcp.f32 %v1378_v13 }
 0x848   : > { %v1381_v14 = vpop.xlane.xlu0 %1380 }
 0x849   : > { %3430 = vrcp.f32 %v1381_v14 }
 0x84c   : > { %v1389_v15 = vpop.permute.xlu0 %1388 }
 0x84d   : > { %v1394_v16 = vsel %vm954_vm2, %v1389_v15, 0 }
 0x84e   : > { %3103 = vmatpush3.bf16.msra.mxu0 %v1394_v16  ;;  %v3320_v16 = vld [vmem:[%s4081_s27] sm:$0xff]  }
 0x84f   : > { %v3429_v17 = vpop.eup %3428  ;;  %3114 = vmatprep.subr.bf16.mxu0 %v3735_v5 }
 0x850   : > { %v1384_v19 = vmul.f32 %v3429_v17, %v3425_v44  ;;  %v1485_v29 = vpop.permute.xlu0 %1484  ;;  %v3321_v17 = vld [vmem:[%s4081_s27 + $0x8] sm:$0xff]  }
 0x852   : > { %v1386_v20 = vpack.c.bf16 %v1384_v19, %v1384_v19  ;;  %v3323_v19 = vld [vmem:[%s4081_s27 + $0x18] sm:$0xff]  }
 0x853   : > { %v3431_v21 = vpop.eup %3430 }
 0x854   : > { %v1385_v22 = vmul.f32 %v3431_v21, %v3427_v12  ;;  %3105 = vmatmul.mubr.msk.bf16.vlgmr.msra.gmra.mrb[16].mxu0 %vm926_vm3, %v1386_v20  ;;  %v3324_v20 = vld [vmem:[%s4081_s27 + $0x20] sm:$0xff]   ;;  %v3325_v21 = vld [vmem:[%s4081_s27 + $0x28] sm:$0xff]  }
 0x855   : > { %3116 = vmatprep.mubr.msk.bf16.mxu0 %vm3736_vm0, %v3735_v5 }
 0x856   : > { %v1387_v24 = vpack.c.bf16 %v1385_v22, %v1385_v22  ;;  %v3326_v22 = vld [vmem:[%s4081_s27 + $0x30] sm:$0xff]  }
 0x857   : > { %3115 = vmatpush3.bf16.xpose.msra.mxu0 %v1492_v49 }
 0x858   : > { %3111 = vmatmul.mubr.msk.bf16.vlgmr.msra.gmra.mrb[32].mxu1 %vm926_vm3, %v1387_v24  ;;  %3126 = vmatprep.subr.bf16.mxu0 %v3735_v5 }
 0x859   : > { %3121 = vmatpush3.bf16.xpose.msra.mxu1 %v1542_v27  ;;  %3122 = vmatprep.mubr.msk.bf16.mxu1 %vm3736_vm0, %v3735_v5 }
 0x85a   : > { %3132 = vmatprep.subr.bf16.mxu1 %v3735_v5 }
 0x85e   : > { %3117 = vmatmul.mubr.msk.bf16.vlgmr.msra.gmra.mrb[20].mxu0 %vm833_vm1, %v1485_v29 }
 0x85f   : > { %3128 = vmatprep.mubr.msk.bf16.mxu0 %vm3736_vm0, %v3735_v5 }
 0x860   : > { %3123 = vmatmul.mubr.msk.bf16.vlgmr.msra.gmra.mrb[36].mxu1 %vm833_vm1, %v1535_v30 }
 0x861   : > { %3134 = vmatprep.mubr.msk.bf16.mxu1 %vm3736_vm0, %v3735_v5 }
 0x927   : > { %v1430_v31 = vpop.f32.mrb[16].mxu0 }
 0x928   : > { %v3106_v34 = vpop.f32.mrb[17].mxu0 }
 0x929   : > { %v1433_v36 = vpop.f32.mrb[18].mxu0 }
 0x92a   : > { %v3107_v37 = vpop.f32.mrb[19].mxu0 }
 0x92b   : > { %v1478_v38 = vpop.f32.mrb[32].mxu1 }
 0x92c   : > { %v3278_v40 = vpack.i.bf16 %v1478_v38, %v1430_v31  ;;  %v3112_v41 = vpop.f32.mrb[33].mxu1 }
 0x92d   : > { %v1481_v42 = vpop.f32.mrb[34].mxu1 }
 0x92e   : > { %v3113_v47 = vpop.f32.mrb[35].mxu1 }
 0x931   : > { %v1528_v50 = vpop.f32.mrb[20].mxu0 }
 0x932   : > { %v3118_v51 = vpop.f32.mrb[21].mxu0  ;;  %v1584_v52 = vsel %vm926_vm3, %v1528_v50, -inf }
 0x933   : > { %1585 = vmax.xlane.f32.xlu0 %v1584_v52  ;;  %v1531_v55 = vpop.f32.mrb[22].mxu0  ;;  %v1578_v56 = vpop.f32.mrb[36].mxu1 }
 0x934   : > { %v3119_v58 = vpop.f32.mrb[23].mxu0  ;;  %v3124_v59 = vpop.f32.mrb[37].mxu1  ;;  %v1587_v61 = vsel %vm926_vm3, %v1578_v56, -inf }
 0x935   : > { %1588 = vmax.xlane.f32.xlu1 %v1587_v61  ;;  %v1581_v62 = vpop.f32.mrb[38].mxu1 }
 0x936   : > { %v3125_v63 = vpop.f32.mrb[39].mxu1 }
 0x946   : > { %1656 = vrot.lane.b32.xlu1 %v4211_v28, %s3739_s18 }
 0x94a   : > { %3274 = vrot.lane.b32.xlu1 %v3273_v46, %s3739_s18 }
 0x94e   : > { %3279 = vrot.lane.b32.xlu1 %v3278_v40, %s3738_s14 }
 0x9c0   : > { %v1586_v0 = vpop.xlane.xlu0 %1585 }
 0x9c1   : > { %v1590_v1 = vsub.f32 %v1528_v50, %v1586_v0  ;;  %v4355_v0 = vld [vmem:[%s4105_s19] sm:$0xff] }
 0x9c2   : > { %v1589_v2 = vpop.xlane.xlu1 %1588 }
 0x9c3   : > { %v1592_v3 = vmul.f32 1.442695, %v1590_v1  ;;  %v1591_v6 = vsub.f32 %v1578_v56, %v1589_v2 }
 0x9c5   : > { %3432 = vpow2.f32 %v1592_v3  ;;  %v1594_v7 = vmul.f32 1.442695, %v1591_v6 }
 0x9c6   : > { %v1657_v8 = vpop.permute.xlu1 %1656 }
 0x9c7   : > { %3434 = vpow2.f32 %v1594_v7  ;;  %v1662_v9 = vsel %vm954_vm2, %v1657_v8, 0 }
 0x9c8   : > { %3133 = vmatpush3.bf16.msra.mxu1 %v1662_v9  ;;  %v3328_v9 = vld [vmem:[%s4087_s17] ss:$16 sps:$4 sm:$0xff]  }
 0x9ca   : > { %v3275_v38 = vpop.permute.xlu1 %3274 }
 0x9cb   : > { %v3277_v41 = vunpack.i.h.bf16 %v3275_v38  ;;  %v3276_v42 = vunpack.i.l.bf16 %v3275_v38  ;;  %v3364_v38 = vld [vmem:[%s4087_s17 + $0xc0] ss:$16 sps:$4 sm:$0xff]  }
 0x9cd   : > { %v1729_v51 = vsel %vm833_vm1, %v4233_v57, %v3277_v41  ;;  %v1728_v52 = vsel %vm833_vm1, %v4230_v43, %v3276_v42  ;;  %v1757_v43 = vrot.slane %v4355_v0, %v4162_v35  ;;  %v3372_v41 = vld [vmem:[%s4087_s17 + $0xe4] ss:$16 sps:$4 sm:$0xff]   ;;  %v3375_v42 = vld [vmem:[%s4087_s17 + $0xec] ss:$16 sps:$4 sm:$0xff]  }
 0x9ce   : > { %v3280_v40 = vpop.permute.xlu1 %3279 }
 0x9cf   : > { %v3433_v28 = vpop.eup %3432  ;;  %v3282_v47 = vunpack.i.h.bf16 %v3280_v40 }
 0x9d0   : > { %v1596_v10 = vsel %vm926_vm3, %v3433_v28, 0.0 }
 0x9d1   : > { %v3435_v11 = vpop.eup %3434  ;;  %1597 = vadd.xlane.f32.xlu0 %v1596_v10  ;;  %v1732_v59 = vsel %vm1730_vm4, %v1729_v51, %v3282_v47  ;;  %v3331_v10 = vld [vmem:[%s4087_s17 + $0x8] ss:$16 sps:$4 sm:$0xff]   ;;  %v3370_v47 = vld [vmem:[%s4087_s17 + $0xe0] ss:$16 sps:$4 sm:$0xff]  }
 0x9d2   : > { %v1599_v39 = vsel %vm926_vm3, %v3435_v11, 0.0  ;;  %v3377_v51 = vld [vmem:[%s4089_s20 + $0xc0] sm:$0xff]  }
 0x9d5   : > { %1600 = vadd.xlane.f32.xlu0 %v1599_v39  ;;  %v3336_v39 = vld [vmem:[%s4087_s17 + $0x24] ss:$16 sps:$4 sm:$0xff]  }
 0x9eb   : > { %1608 = vrot.lane.b32.xlu0 %v4192_v60, %s3739_s18 }
 0xa5e   : > { %v1598_v45 = vpop.xlane.xlu0 %1597 }
 0xa5f   : > { %3436 = vrcp.f32 %v1598_v45  ;;  %v3339_v45 = vld [vmem:[%s4087_s17 + $0x2c] ss:$16 sps:$4 sm:$0xff]  }
 0xa62   : > { %v1601_v46 = vpop.xlane.xlu0 %1600 }
 0xa63   : > { %3438 = vrcp.f32 %v1601_v46  ;;  %v3334_v46 = vld [vmem:[%s4087_s17 + $0x20] ss:$16 sps:$4 sm:$0xff]  }
 0xa66   : > { %v1609_v44 = vpop.permute.xlu0 %1608 }
 0xa67   : > { %v1614_v48 = vsel %vm954_vm2, %v1609_v44, 0 }
 0xa68   : > { %3127 = vmatpush3.bf16.msra.mxu0 %v1614_v48 }
 0xa69   : > { %v3437_v12 = vpop.eup %3436  ;;  %3138 = vmatprep.subr.bf16.mxu0 %v3735_v5 }
 0xa6a   : > { %v1604_v53 = vmul.f32 %v3437_v12, %v3433_v28  ;;  %v3330_v28 = vld [vmem:[%s4087_s17 + $0x4] ss:$16 sps:$4 sm:$0xff]  }
 0xa6b   : > { %2099 = vmatprep.subr.bf16.mxu1 %v3330_v28 }
 0xa6c   : > { %v1606_v13 = vpack.c.bf16 %v1604_v53, %v1604_v53 }
 0xa6d   : > { %v3439_v14 = vpop.eup %3438 }
 0xa6e   : > { %v1605_v15 = vmul.f32 %v3439_v14, %v3435_v11  ;;  %3129 = vmatmul.mubr.msk.bf16.vlgmr.msra.gmra.mrb[24].mxu0 %vm926_vm3, %v1606_v13  ;;  %v3333_v11 = vld [vmem:[%s4087_s17 + $0xc] ss:$16 sps:$4 sm:$0xff]  }
 0xa6f   : > { %3154 = vmatprep.mubr.msk.bf16.mxu0 %vm3736_vm0, %v3735_v5  ;;  %3139 = vmatpush3.bf16.msra.mxu0 %v3320_v16  ;;  %v3345_v16 = vld [vmem:[%s4087_s17 + $0x4c] ss:$16 sps:$4 sm:$0xff]  }
 0xa70   : > { %v1607_v60 = vpack.c.bf16 %v1605_v15, %v1605_v15  ;;  %3140 = vmatprep.subr.bf16.mxu0 %v3735_v5 }
 0xa72   : > { %3135 = vmatmul.mubr.msk.bf16.vlgmr.msra.gmra.mrb[40].mxu1 %vm926_vm3, %v1607_v60  ;;  %v3342_v60 = vld [vmem:[%s4087_s17 + $0x44] ss:$16 sps:$4 sm:$0xff]  }
 0xa73   : > { %2131 = vmatprep.mubr.bf16.mxu1 %v3734_v4  ;;  %3141 = vmatpush3.bf16.msra.mxu0 %v3321_v17  ;;  %v3340_v17 = vld [vmem:[%s4087_s17 + $0x40] ss:$16 sps:$4 sm:$0xff]  }
 0xa74   : > { %3142 = vmatprep.subr.bf16.mxu0 %v3735_v5  ;;  %2100 = vmatpush1.bf16.msra.mxu1 %v3328_v9  ;;  %v3379_v9 = vld [vmem:[%s4089_s20 + $0x80] sm:$0xff]  }
 0xa75   : > { %2101 = vmatprep.subr.bf16.mxu1 %v3336_v39  ;;  %v3382_v39 = vld [vmem:[%s4089_s20 + $0x8] sm:$0xff]  }
 0xa77   : > { %3143 = vmatpush3.bf16.msra.mxu0 %v3322_v18  ;;  %v3343_v18 = vld [vmem:[%s4087_s17 + $0x48] ss:$16 sps:$4 sm:$0xff]  }
 0xa78   : > { %3144 = vmatprep.subr.bf16.mxu0 %v3735_v5  ;;  %2102 = vmatpush1.bf16.msra.mxu1 %v3334_v46  ;;  %v3384_v46 = vld [vmem:[%s4089_s20 + $0x50] sm:$0xff]  }
 0xa79   : > { %2103 = vmatprep.subr.bf16.mxu1 %v3342_v60  ;;  %v3394_v60 = vld [vmem:[%s4089_s20 + $0x20] sm:$0xff]  }
 0xa7b   : > { %3145 = vmatpush3.bf16.msra.mxu0 %v3323_v19  ;;  %v3348_v19 = vld [vmem:[%s4087_s17 + $0x64] ss:$16 sps:$4 sm:$0xff]  }
 0xa7c   : > { %3146 = vmatprep.subr.bf16.mxu0 %v3735_v5  ;;  %2104 = vmatpush1.bf16.msra.mxu1 %v3340_v17  ;;  %v3396_v17 = vld [vmem:[%s4089_s20 + $0x68] sm:$0xff]  }
 0xa7d   : > { %2105 = vmatprep.subr.bf16.mxu1 %v3348_v19  ;;  %v3398_v19 = vld [vmem:[%s4089_s20 + $0x28] sm:$0xff]  }
 0xa7f   : > { %3147 = vmatpush3.bf16.msra.mxu0 %v3324_v20  ;;  %v3351_v20 = vld [vmem:[%s4087_s17 + $0x6c] ss:$16 sps:$4 sm:$0xff]  }
 0xa80   : > { %3148 = vmatprep.subr.bf16.mxu0 %v3735_v5 }
 0xa83   : > { %3149 = vmatpush3.bf16.msra.mxu0 %v3325_v21  ;;  %v3346_v21 = vld [vmem:[%s4087_s17 + $0x60] ss:$16 sps:$4 sm:$0xff]  }
 0xa84   : > { %3150 = vmatprep.subr.bf16.mxu0 %v3735_v5  ;;  %2106 = vmatpush1.bf16.msra.mxu1 %v3346_v21  ;;  %v3400_v21 = vld [vmem:[%s4089_s20 + $0x70] sm:$0xff]  }
 0xa87   : > { %3151 = vmatpush3.bf16.msra.mxu0 %v3326_v22  ;;  %v3349_v22 = vld [vmem:[%s4087_s17 + $0x68] ss:$16 sps:$4 sm:$0xff]  }
 0xa88   : > { %3152 = vmatprep.subr.bf16.mxu0 %v3735_v5  ;;  %v3281_v5 = vunpack.i.l.bf16 %v3280_v40  ;;  %v3367_v40 = vld [vmem:[%s4087_s17 + $0xc8] ss:$16 sps:$4 sm:$0xff]  }
 0xa8a   : > { %v1731_v58 = vsel %vm1730_vm4, %v1728_v52, %v3281_v5  ;;  %v3373_v5 = vld [vmem:[%s4087_s17 + $0xe8] ss:$16 sps:$4 sm:$0xff]  }
 0xa8b   : > { %3153 = vmatpush3.bf16.msra.mxu0 %v3327_v23  ;;  %v3354_v23 = vld [vmem:[%s4087_s17 + $0x84] ss:$16 sps:$4 sm:$0xff]  }
 0xa8c   : > { %2142 = vmatprep.subr.bf16.mxu0 %v3333_v11  ;;  %2107 = vmatprep.subr.bf16.mxu1 %v3354_v23  ;;  %v3381_v11 = vld [vmem:[%s4089_s20 + $0xc8] sm:$0xff]   ;;  %v3402_v23 = vld [vmem:[%s4089_s20 + $0x30] sm:$0xff]  }
 0xb41   : > { %v1650_v49 = vpop.f32.mrb[24].mxu0 }
 0xb42   : > { %v3130_v24 = vpop.f32.mrb[25].mxu0 }
 0xb43   : > { %v1653_v27 = vpop.f32.mrb[26].mxu0  ;;  %v3352_v24 = vld [vmem:[%s4087_s17 + $0x80] ss:$16 sps:$4 sm:$0xff]  }
 0xb44   : > { %v3131_v29 = vpop.f32.mrb[27].mxu0  ;;  %v3355_v27 = vld [vmem:[%s4087_s17 + $0x88] ss:$16 sps:$4 sm:$0xff]   ;;  %2108 = vmatpush1.bf16.msra.mxu1 %v3352_v24 }
 0xb45   : > { %v1698_v30 = vpop.f32.mrb[40].mxu1  ;;  %v3360_v29 = vld [vmem:[%s4087_s17 + $0xa4] ss:$16 sps:$4 sm:$0xff]   ;;  %v3404_v24 = vld [vmem:[%s4089_s20 + $0x78] sm:$0xff]  }
 0xb46   : > { %v3283_v31 = vpack.i.bf16 %v1698_v30, %v1650_v49  ;;  %v3136_v34 = vpop.f32.mrb[41].mxu1  ;;  %v3357_v49 = vld [vmem:[%s4087_s17 + $0x8c] ss:$16 sps:$4 sm:$0xff]   ;;  %2109 = vmatprep.subr.bf16.mxu1 %v3360_v29 }
 0xb47   : > { %v1701_v36 = vpop.f32.mrb[42].mxu1  ;;  %v3363_v30 = vld [vmem:[%s4087_s17 + $0xac] ss:$16 sps:$4 sm:$0xff]   ;;  %v3361_v34 = vld [vmem:[%s4087_s17 + $0xa8] ss:$16 sps:$4 sm:$0xff]  }
 0xb48   : > { %3284 = vrot.lane.b32.xlu0 %v3283_v31, %s3737_s30  ;;  %v3137_v37 = vpop.f32.mrb[43].mxu1  ;;  %v3358_v31 = vld [vmem:[%s4087_s17 + $0xa0] ss:$16 sps:$4 sm:$0xff]   ;;  %v3366_v36 = vld [vmem:[%s4087_s17 + $0xc4] ss:$16 sps:$4 sm:$0xff]   ;;  %v3406_v29 = vld [vmem:[%s4089_s20 + $0x38] sm:$0xff]  }
 0xb49   : > { %2110 = vmatpush1.bf16.msra.mxu1 %v3358_v31  ;;  %v3369_v37 = vld [vmem:[%s4087_s17 + $0xcc] ss:$16 sps:$4 sm:$0xff]  }
 0xb4a   : > { %2111 = vmatprep.subr.bf16.mxu1 %v3366_v36  ;;  %v1917_v31 = vld [vmem:[%s4100_s5] sm:$0xf] }
 0xb4b   : > { %v1922_v36 = vrot.slane %v1917_v31, %v4162_v35 }
 0xb4d   : > { %2112 = vmatpush1.bf16.msra.mxu1 %v3364_v38  ;;  %v1926_v38 = vrot.slane %v1917_v31, %v4158_v33 }
 0xb4e   : > { %2113 = vmatprep.subr.bf16.mxu1 %v3372_v41 }
 0xb51   : > { %2114 = vmatpush1.bf16.msra.mxu1 %v3370_v47 }
 0xbba   : > { %v3285_v50 = vpop.permute.xlu0 %3284 }
 0xbbb   : > { %v3287_v55 = vunpack.i.h.bf16 %v3285_v50  ;;  %v3286_v56 = vunpack.i.l.bf16 %v3285_v50  ;;  %v3376_v50 = vld [vmem:[%s4089_s20 + $0x40] sm:$0xff]  }
 0xbbc   : > { %2978 = vmatprep.subr.bf16.mxu1 %v3376_v50 }
 0xbbd   : > { %v1735_v61 = vsel %vm1733_vm5, %v1732_v59, %v3287_v55  ;;  %v1734_v62 = vsel %vm1733_vm5, %v1731_v58, %v3286_v56 }
 0xbbe   : > { %v1737_v63 = vpack.c.bf16 %v1735_v61, %v1734_v62 }
 0xbc0   : > { %3155 = vmatmul.mubr.bf16.vlgmr.msra.gmra.mrb[28].mxu0 %v1737_v63  ;;  %v1875_v63 = vrot.slane %v4355_v0, %v4158_v33 }
 0xbc1   : > { %2174 = vmatprep.mubr.bf16.mxu0 %v3734_v4  ;;  %2143 = vmatpush1.bf16.msra.mxu0 %v3331_v10  ;;  %v3380_v10 = vld [vmem:[%s4089_s20 + $0x48] sm:$0xff]  }
 0xbc2   : > { %2144 = vmatprep.subr.bf16.mxu0 %v3339_v45  ;;  %v3383_v45 = vld [vmem:[%s4089_s20 + $0x88] sm:$0xff]  }
 0xc93   : > { %v1840_v57 = vpop.f32.mrb[28].mxu0 }
 0xc94   : > { %v1841_v1 = vadd.f32 %v1840_v57, %v1757_v43  ;;  %v3156_v2 = vpop.f32.mrb[29].mxu0 }
 0xc95   : > { %v1843_v3 = vpop.f32.mrb[30].mxu0 }
 0xc96   : > { %v1844_v6 = vadd.f32 %v1843_v3, %v1757_v43  ;;  %v3157_v7 = vpop.f32.mrb[31].mxu0  ;;  %v1847_v8 = vadd.f32 %v1841_v1, %v4134_v25  ;;  %v3337_v25 = vld [vmem:[%s4087_s17 + $0x28] ss:$16 sps:$4 sm:$0xff]   ;;  %v1881_v3 = vrot.slane %v4355_v0, %v4189_v54 }
 0xc97   : > { %2145 = vmatpush1.bf16.msra.mxu0 %v3337_v25  ;;  %v3385_v25 = vld [vmem:[%s4089_s20 + $0xd0] sm:$0xff]  }
 0xc98   : > { %1849 = vadd.xlane.f32.xlu1 %v1847_v8  ;;  %v1848_v4 = vadd.f32 %v1844_v6, %v4136_v26  ;;  %2146 = vmatprep.subr.bf16.mxu0 %v3345_v16  ;;  %v3395_v16 = vld [vmem:[%s4089_s20 + $0xa0] sm:$0xff]  }
 0xc9a   : > { %1851 = vadd.xlane.f32.xlu0 %v1848_v4 }
 0xc9b   : > { %2147 = vmatpush1.bf16.msra.mxu0 %v3343_v18  ;;  %v3397_v18 = vld [vmem:[%s4089_s20 + $0xe8] sm:$0xff]  }
 0xc9c   : > { %2148 = vmatprep.subr.bf16.mxu0 %v3351_v20  ;;  %v3399_v20 = vld [vmem:[%s4089_s20 + $0xa8] sm:$0xff]  }
 0xc9f   : > { %2149 = vmatpush1.bf16.msra.mxu0 %v3349_v22  ;;  %v3401_v22 = vld [vmem:[%s4089_s20 + $0xf0] sm:$0xff]  }
 0xca0   : > { %2150 = vmatprep.subr.bf16.mxu0 %v3357_v49  ;;  %v3403_v49 = vld [vmem:[%s4089_s20 + $0xb0] sm:$0xff]  }
 0xca3   : > { %2151 = vmatpush1.bf16.msra.mxu0 %v3355_v27  ;;  %v3405_v27 = vld [vmem:[%s4089_s20 + $0xf8] sm:$0xff]  }
 0xca4   : > { %2152 = vmatprep.subr.bf16.mxu0 %v3363_v30  ;;  %v3407_v30 = vld [vmem:[%s4089_s20 + $0xb8] sm:$0xff]  }
 0xca7   : > { %2153 = vmatpush1.bf16.msra.mxu0 %v3361_v34  ;;  %v1933_v34 = vsub.s32 3, %v4155_v32 }
 0xca8   : > { %2154 = vmatprep.subr.bf16.mxu0 %v3369_v37  ;;  %v1930_v37 = vrot.slane %v1917_v31, %v4189_v54 }
 0xcab   : > { %2155 = vmatpush1.bf16.msra.mxu0 %v3367_v40  ;;  %v1934_v40 = vrot.slane %v1917_v31, %v1933_v34 }
 0xcac   : > { %2156 = vmatprep.subr.bf16.mxu0 %v3375_v42 }
 0xcaf   : > { %2157 = vmatpush1.bf16.msra.mxu0 %v3373_v5 }
 0xcb0   : > { %3000 = vmatprep.subr.bf16.mxu0 %v3377_v51 }
 0xd25   : > { %v1850_v26 = vpop.xlane.xlu1 %1849 }
 0xd26   : > { %v1854_v44 = vmul.f32 0.0078125, %v1850_v26  ;;  %v3386_v26 = vld [vmem:[%s4089_s20 + $0x10] sm:$0xff]  }
 0xd27   : > { %v1852_v48 = vpop.xlane.xlu0 %1851 }
 0xd28   : > { %v4369_v12 = vsub.f32 %v1847_v8, %v1854_v44  ;;  %v1855_v53 = vmul.f32 0.0078125, %v1852_v48  ;;  %v3387_v44 = vld [vmem:[%s4089_s20 + $0x90] sm:$0xff]   ;;  %v3388_v48 = vld [vmem:[%s4089_s20 + $0x58] sm:$0xff]  }
 0xd2a   : > { %v4371_v13 = vsub.f32 %v1848_v4, %v1855_v53  ;;  %v1858_v14 = vmul.f32 %v4369_v12, %v4369_v12  ;;  %v3378_v4 = vld [vmem:[%s4089_s20] sm:$0xff]   ;;  %v3390_v53 = vld [vmem:[%s4089_s20 + $0x18] sm:$0xff]  }
 0xd2c   : > { %1860 = vadd.xlane.f32.xlu0 %v1858_v14  ;;  %v1859_v15 = vmul.f32 %v4371_v13, %v4371_v13  ;;  %v3392_v14 = vld [vmem:[%s4089_s20 + $0x60] sm:$0xff]  }
 0xd30   : > { %1862 = vadd.xlane.f32.xlu0 %v1859_v15  ;;  %v3393_v15 = vld [vmem:[%s4089_s20 + $0xe0] sm:$0xff]  }
 0xdb9   : > { %v1861_v52 = vpop.xlane.xlu0 %1860 }
 0xdba   : > { %v1864_v55 = vmul.f32 0.0078125, %v1861_v52 }
 0xdbc   : > { %v1866_v56 = vadd.f32 1e-05, %v1864_v55 }
 0xdbd   : > { %v1863_v58 = vpop.xlane.xlu0 %1862 }
 0xdbe   : > { %3440 = vrsqrt.f32 %v1866_v56  ;;  %v1865_v59 = vmul.f32 0.0078125, %v1863_v58 }
 0xdc0   : > { %v1867_v61 = vadd.f32 1e-05, %v1865_v59 }
 0xdc2   : > { %3442 = vrsqrt.f32 %v1867_v61 }
 0xdc8   : > { %v3441_v62 = vpop.eup %3440 }
 0xdc9   : > { %v1870_v43 = vmul.f32 %v3441_v62, %v4369_v12  ;;  %v3389_v12 = vld [vmem:[%s4089_s20 + $0xd8] sm:$0xff]  }
 0xdcb   : > { %v1876_v2 = vmul.f32 %v1875_v63, %v1870_v43 }
 0xdcc   : > { %v3443_v57 = vpop.eup %3442 }
 0xdcd   : > { %v1871_v1 = vmul.f32 %v3443_v57, %v4371_v13  ;;  %v4409_v7 = vadd.f32 %v1881_v3, %v1876_v2  ;;  %v3391_v13 = vld [vmem:[%s4089_s20 + $0x98] sm:$0xff]  }
 0xdcf   : > { %v1877_v6 = vmul.f32 %v1875_v63, %v1871_v1 }
 0xdd1   : > { %v4411_v8 = vadd.f32 %v1881_v3, %v1877_v6 }
 0xdd3   : > { %v1884_v28 = vpack.c.bf16 %v4411_v8, %v4409_v7 }
 0xdd5   : > { %2132 = vmatmul.mubr.bf16.vlgmr.msra.gmra.mrb[44].mxu1 %v1884_v28  ;;  %2175 = vmatmul.mubr.bf16.vlgmr.msra.gmra.mrb[32].mxu0 %v1884_v28 }
 0xdd6   : > { %2979 = vmatpush3.bf16.msra.mxu1 %v3378_v4  ;;  %3001 = vmatpush3.bf16.msra.mxu0 %v3379_v9 }
 0xdd7   : > { %2980 = vmatprep.subr.bf16.mxu1 %v3380_v10  ;;  %3002 = vmatprep.subr.bf16.mxu0 %v3381_v11 }
 0xdda   : > { %2981 = vmatpush3.bf16.msra.mxu1 %v3382_v39  ;;  %3003 = vmatpush3.bf16.msra.mxu0 %v3383_v45 }
 0xddb   : > { %2982 = vmatprep.subr.bf16.mxu1 %v3384_v46  ;;  %3004 = vmatprep.subr.bf16.mxu0 %v3385_v25  ;;  %v2264_v46 = vrot.slane %v4355_v0, %v1933_v34 }
 0xdde   : > { %2983 = vmatpush3.bf16.msra.mxu1 %v3386_v26  ;;  %3005 = vmatpush3.bf16.msra.mxu0 %v3387_v44 }
 0xddf   : > { %2984 = vmatprep.subr.bf16.mxu1 %v3388_v48  ;;  %3006 = vmatprep.subr.bf16.mxu0 %v3389_v12 }
 0xde2   : > { %2985 = vmatpush3.bf16.msra.mxu1 %v3390_v53  ;;  %3007 = vmatpush3.bf16.msra.mxu0 %v3391_v13 }
 0xde3   : > { %2986 = vmatprep.subr.bf16.mxu1 %v3392_v14  ;;  %3008 = vmatprep.subr.bf16.mxu0 %v3393_v15 }
 0xde6   : > { %2987 = vmatpush3.bf16.msra.mxu1 %v3394_v60  ;;  %3009 = vmatpush3.bf16.msra.mxu0 %v3395_v16 }
 0xde7   : > { %2988 = vmatprep.subr.bf16.mxu1 %v3396_v17  ;;  %3010 = vmatprep.subr.bf16.mxu0 %v3397_v18 }
 0xdea   : > { %2989 = vmatpush3.bf16.msra.mxu1 %v3398_v19  ;;  %3011 = vmatpush3.bf16.msra.mxu0 %v3399_v20 }
 0xdeb   : > { %2990 = vmatprep.subr.bf16.mxu1 %v3400_v21  ;;  %3012 = vmatprep.subr.bf16.mxu0 %v3401_v22 }
 0xdee   : > { %2991 = vmatpush3.bf16.msra.mxu1 %v3402_v23  ;;  %3013 = vmatpush3.bf16.msra.mxu0 %v3403_v49 }
 0xdef   : > { %2992 = vmatprep.subr.bf16.mxu1 %v3404_v24  ;;  %3014 = vmatprep.subr.bf16.mxu0 %v3405_v27 }
 0xdf2   : > { %2993 = vmatpush3.bf16.msra.mxu1 %v3406_v29  ;;  %3015 = vmatpush3.bf16.msra.mxu0 %v3407_v30 }
 0xea8   : > { %v2133_v41 = vpop.f32.mrb[44].mxu1  ;;  %v2176_v42 = vpop.f32.mrb[32].mxu0 }
 0xea9   : > { %v2134_v47 = vadd.f32 %v2133_v41, %v1922_v36  ;;  %v2177_v5 = vadd.f32 %v2176_v42, %v1930_v37  ;;  %v2135_v50 = vpop.f32.mrb[45].mxu1  ;;  %v2178_v51 = vpop.f32.mrb[33].mxu0  ;;  %v2571_v41 = vsub.s32 5, %v4155_v32 }
 0xeaa   : > { %v2136_v52 = vadd.f32 %v2135_v50, %v1926_v38  ;;  %v2179_v55 = vadd.f32 %v2178_v51, %v1934_v40  ;;  %v2137_v56 = vpop.f32.mrb[46].mxu1  ;;  %v2180_v58 = vpop.f32.mrb[34].mxu0 }
 0xeab   : > { %v2138_v59 = vadd.f32 %v2137_v56, %v1922_v36  ;;  %v2181_v61 = vadd.f32 %v2180_v58, %v1930_v37  ;;  %v2139_v62 = vpop.f32.mrb[47].mxu1  ;;  %v2182_v63 = vpop.f32.mrb[35].mxu0  ;;  %v2185_v54 = vmax.f32 %v2134_v47, 0.0  ;;  %v2187_v57 = vmax.f32 %v2177_v5, 0.0 }
 0xeac   : > { %v2140_v35 = vadd.f32 %v2139_v62, %v1926_v38  ;;  %v2183_v43 = vadd.f32 %v2182_v63, %v1934_v40  ;;  %v2186_v2 = vmax.f32 %v2136_v52, 0.0  ;;  %v2188_v3 = vmax.f32 %v2179_v55, 0.0 }
 0xead   : > { %v2189_v33 = vmax.f32 %v2138_v59, 0.0  ;;  %v2191_v1 = vmax.f32 %v2181_v61, 0.0  ;;  %v2572_v50 = vrot.slane %v4355_v0, %v2571_v41 }
 0xeae   : > { %v2190_v6 = vmax.f32 %v2140_v35, 0.0  ;;  %v2192_v4 = vmax.f32 %v2183_v43, 0.0 }
 0xeaf   : > { %v2193_v9 = vpack.c.bf16 %v2189_v33, %v2185_v54  ;;  %v2195_v28 = vpack.c.bf16 %v2191_v1, %v2187_v57 }
 0xeb0   : > { %v2194_v10 = vpack.c.bf16 %v2190_v6, %v2186_v2  ;;  %v2196_v11 = vpack.c.bf16 %v2192_v4, %v2188_v3 }
 0xeb2   : > { %2489 = vmatprep.mubr.bf16.mxu1 %v2194_v10  ;;  %2530 = vmatprep.mubr.bf16.mxu0 %v2196_v11 }
 0xeb3   : > { %2490 = vmatmul.mubr.bf16.vlgmr.msra.gmra.mrb[48].mxu1 %v2193_v9  ;;  %2531 = vmatmul.mubr.bf16.vlgmr.msra.gmra.mrb[36].mxu0 %v2195_v28 }
 0xf86   : > { %v2994_v39 = vpop.f32.mrb[48].mxu1  ;;  %v3016_v45 = vpop.f32.mrb[36].mxu0 }
 0xf87   : > { %v2995_v25 = vpop.f32.mrb[49].mxu1  ;;  %v3017_v26 = vpop.f32.mrb[37].mxu0 }
 0xf88   : > { %v2996_v44 = vadd.f32 %v2995_v25, %v2994_v39  ;;  %v3018_v48 = vadd.f32 %v3017_v26, %v3016_v45  ;;  %v2997_v12 = vpop.f32.mrb[50].mxu1  ;;  %v3019_v53 = vpop.f32.mrb[38].mxu0 }
 0xf89   : > { %v2998_v13 = vpop.f32.mrb[51].mxu1  ;;  %v3020_v14 = vpop.f32.mrb[39].mxu0 }
 0xf8a   : > { %v2492_v15 = vadd.f32 %v2996_v44, %v2264_v46  ;;  %v2999_v60 = vadd.f32 %v2998_v13, %v2997_v12  ;;  %v3021_v16 = vadd.f32 %v3020_v14, %v3019_v53 }
 0xf8c   : > { %v2533_v17 = vadd.f32 %v3018_v48, %v2492_v15  ;;  %v2495_v18 = vadd.f32 %v2999_v60, %v2264_v46 }
 0xf8e   : > { %v2536_v19 = vadd.f32 %v3021_v16, %v2495_v18  ;;  %v2539_v20 = vadd.f32 %v2533_v17, %v4409_v7 }
 0xf90   : > { %2541 = vadd.xlane.f32.xlu1 %v2539_v20  ;;  %v2540_v21 = vadd.f32 %v2536_v19, %v4411_v8  ;;  %v2565_v8 = vsub.s32 4, %v4155_v32 }
 0xf92   : > { %2543 = vadd.xlane.f32.xlu0 %v2540_v21  ;;  %v2566_v42 = vrot.slane %v4355_v0, %v2565_v8 }
0x101d   : > { %v2542_v22 = vpop.xlane.xlu1 %2541 }
0x101e   : > { %v2545_v23 = vmul.f32 0.0078125, %v2542_v22 }
0x101f   : > { %v2544_v49 = vpop.xlane.xlu0 %2543 }
0x1020   : > { %v2547_v24 = vsub.f32 %v2539_v20, %v2545_v23  ;;  %v2546_v27 = vmul.f32 0.0078125, %v2544_v49 }
0x1022   : > { %v2548_v29 = vsub.f32 %v2540_v21, %v2546_v27  ;;  %v2549_v30 = vmul.f32 %v2547_v24, %v2547_v24 }
0x1024   : > { %2551 = vadd.xlane.f32.xlu1 %v2549_v30  ;;  %v2550_v31 = vmul.f32 %v2548_v29, %v2548_v29 }
0x1026   : > { %2553 = vadd.xlane.f32.xlu0 %v2550_v31 }
0x10b1   : > { %v2552_v34 = vpop.xlane.xlu1 %2551 }
0x10b2   : > { %v2555_v36 = vmul.f32 0.0078125, %v2552_v34 }
0x10b3   : > { %v2554_v37 = vpop.xlane.xlu0 %2553 }
0x10b4   : > { %v2557_v38 = vadd.f32 1e-05, %v2555_v36  ;;  %v2556_v40 = vmul.f32 0.0078125, %v2554_v37 }
0x10b6   : > { %3444 = vrsqrt.f32 %v2557_v38  ;;  %v2558_v7 = vadd.f32 1e-05, %v2556_v40 }
0x10b8   : > { %3446 = vrsqrt.f32 %v2558_v7 }
0x10c0   : > { %v3445_v47 = vpop.eup %3444 }
0x10c1   : > { %v2561_v5 = vmul.f32 %v3445_v47, %v2547_v24 }
0x10c2   : > { %v3447_v51 = vpop.eup %3446 }
0x10c3   : > { %v2562_v52 = vmul.f32 %v3447_v51, %v2548_v29  ;;  %v2567_v55 = vmul.f32 %v2566_v42, %v2561_v5 }
0x10c5   : > { %v2568_v56 = vmul.f32 %v2566_v42, %v2562_v52  ;;  %v2573_v58 = vadd.f32 %v2572_v50, %v2567_v55 }
0x10c7   : > { %v2574_v59 = vadd.f32 %v2572_v50, %v2568_v56  ;;  %2575 = vst [vmem:[#allocation13] sm:$0xff] %v2573_v58 }
0x10c9   : > { %2576 = vst [vmem:[#allocation13 + $0x8] sm:$0xff] %v2574_v59 }
0x10ca   : > { %3639 = shalt.err (!%p3636_p11)
}
0x10cb   : > { %s4550_s27 = sld [smem:[#allocation27_spill]] }
0x10d1   : > { %s4551_s3 = smov %s4550_s27  ;;  %s3640_s17 = scalar_lea.hbm %s4550_s27, 256 }
0x10d2   : > { %p3641_p8 = scmp.ne.s32.totalorder %s4551_s3, %s3640_s17  ;;  %p3646_p3 = scmp.lt.u32.totalorder %s3640_s17, %s4551_s3 }
0x10d4   : > { %p3642_p4 = pnand %p3641_p8, %p3205_p7 }
0x10d6   : > { %p3643_p6 = pneg %p3642_p4 }
0x10d8   : > { %p3648_p12 = pnand %p3646_p3, %p3643_p6 }
0x10da   : > { %3651 = shalt.err (!%p3648_p12)
}
0x10db   : > { %s3741_s16 = smov 128   ;;  %s3742_s26 = smov 8  }
0x10dc   : > { %3179 = dma.vmem_to_hbm [thread:$0]  (%p3205_p7), %s2587_s24, 256, %s4551_s3, [#allocation4], %s3741_s16, %s3741_s16, %s3742_s26  }
0x10dd   : > { %3693 = dma.done.wait (%p3205_p7), [#allocation4], 256  }
0x10de   : > { %3695 = vsyncadd (%p3205_p7), [#allocation4], 4294967040 }
0x10df PF: > { %s4552_s5 = sld [smem:[#allocation20_spill]]  ;;  %s4553_s7 = sld [smem:[#allocation19_spill]] }
0x10e0   : > { %s4554_s29 = sld [smem:[#allocation22_spill]]  ;;  %s4555_s22 = sld [smem:[#allocation21_spill]] }
0x10e1   : > { %s4556_s27 = smov %s3702_s28  ;;  %s4558_s30 = smov %s3714_s9 }
0x10e5   : > { %s29_s10 = sadd.s32 1, %s4552_s5   ;;  %s4557_s28 = smov %s4553_s7 }
0x10e6   : > { %p26_p9 = scmp.ge.s32.totalorder %s29_s10, 4   ;;  %s4559_s9 = smov %s4555_s22 }
0x10e8   :  { %28 = sbr.rel (!%p26_p9) target bundleno = 16 (0x10), region = 154 }
0x10ef   :  { %2602 = vsyncpa [#allocation3], 1 }
0x10f0   :  { %2604 = vsyncpa [#allocation3 + $0x1], 1 }
0x10f1   :  { %2605 = vsyncpa [#allocation6], 1 }
0x10f2   :  { %2607 = vsyncpa [#allocation6 + $0x1], 1 }
0x10f3   :  { %2608 = vsyncpa [#allocation9], 1 }
0x10f4   :  { %2610 = vsyncpa [#allocation9 + $0x1], 1 }
0x10f5   :  { %2611 = vsyncpa [#allocation12], 1 }
0x10f6   :  { %2613 = vsyncpa [#allocation12 + $0x1], 1 }
0x10f7   :  { %2614 = vsyncpa [#allocation4], 1 }
0x10f8   :  { %2616 = vsyncpa [#allocation4 + $0x1], 1 }

</bundles_post_ra>
